<compile_context>
chip_gen: v5e
topology: v5e:2x2
jax: 0.10.0
libtpu: 0.0.40
codegen_flags: <defaults>
</compile_context>

<pallas_src>
import jax
import jax.numpy as jnp
import numpy as np
from jax.experimental import pallas as pl
from jax.experimental.pallas import tpu as pltpu

# ----------------------------- model dims ----------------------------------
D_MODEL = 32
NUM_LAYERS = 2
NUM_HEADS = 4                      # d_model // 64 would be 0, so set explicitly
NUM_GROUPS = NUM_HEADS             # default: num_groups = num_heads
HEAD_DIM = D_MODEL // NUM_HEADS    # 8
D_FF = 4 * D_MODEL                 # 128
BATCH = 2
SEQ = 8
BS = BATCH * SEQ                   # 16  (flattened batch*seq = matmul M dim)
HBS = NUM_HEADS * BS               # 64  (head-stacked key axis, lane dim of scores)
EPS = 1e-5
SCALE = 1.0 / (HEAD_DIM ** 0.5)


# ----------------------------- kernel helpers --------------------------------
def _layernorm(v, w, b):
    # v, w, b: (M, D); w/b pre-broadcast so no broadcast_in_dim is emitted.
    mu = jnp.mean(v, axis=-1, keepdims=True)
    var = jnp.mean((v - mu) ** 2, axis=-1, keepdims=True)
    return (v - mu) * jax.lax.rsqrt(var + EPS) * w + b


def _head_norm(v, mean, avg_bf16, w, b):
    # Per-head LayerNorm, all heads at once. The per-head mean arrives
    # precomputed (folded into the QKV projection); only the variance needs a
    # block-diagonal averaging matmul here.
    c = v - mean
    var = jnp.dot((c * c).astype(jnp.bfloat16), avg_bf16,
                  preferred_element_type=jnp.float32)
    return c * jax.lax.rsqrt(var + EPS) * w + b


# ----------------------------- fused kernel ----------------------------------
def encoder_kernel(x_ref, wqkv_ref, wo_ref, wg1_ref, wfc2_ref,
                   norms_ref, final_ref,
                   avg_ref, smask_ref, bias_ref, seg_ref,
                   o_ref):
    x = x_ref[...]                          # (BS, D) f32 residual stream

    avg_bf16 = avg_ref[...]                 # (D, D)     bf16 block-diag 1/HEAD_DIM
    stack_m = smask_ref[...]                # (HBS, D)   f32 head-selection 0/1 mask
    attn_b = bias_ref[...]                  # (BS, HBS)  f32 batch block-diag bias
    seg_ones = seg_ref[...]                 # (HBS, HBS) bf16 per-head-segment ones

    for l in range(NUM_LAYERS):             # unrolled; all weights stay resident
        # norm params pre-broadcast to (BS, D); softmax SCALE folded into q-norm
        ln1w, ln1b = norms_ref[l, 0], norms_ref[l, 1]
        ln2w, ln2b = norms_ref[l, 2], norms_ref[l, 3]
        qnw, qnb = norms_ref[l, 4], norms_ref[l, 5]
        knw, knb = norms_ref[l, 6], norms_ref[l, 7]

        # ---- pre-norm self-attention block ----
        h = _layernorm(x, ln1w, ln1b)
        qkv = jnp.dot(h.astype(jnp.bfloat16), wqkv_ref[l],
                      preferred_element_type=jnp.float32)        # (BS, 5D)
        q = qkv[:, 0:D_MODEL]
        k = qkv[:, D_MODEL:2 * D_MODEL]
        v = qkv[:, 2 * D_MODEL:3 * D_MODEL]
        q_mean = qkv[:, 3 * D_MODEL:4 * D_MODEL]   # per-head means (folded weights)
        k_mean = qkv[:, 4 * D_MODEL:5 * D_MODEL]

        qn = _head_norm(q, q_mean, avg_bf16, qnw, qnb)   # SCALE folded into qnw/qnb
        kn = _head_norm(k, k_mean, avg_bf16, knw, knb)

        # Head-stacked K / V: row block h carries only head-h lanes.
        k_stack = (jnp.tile(kn, (NUM_HEADS, 1)) * stack_m).astype(jnp.bfloat16)
        v_stack = (jnp.tile(v, (NUM_HEADS, 1)) * stack_m).astype(jnp.bfloat16)

        # Lane-dense scores: s[i, h*BS + j] = q_i^(h) . k_j^(h)   -> (16, 64)
        s = jax.lax.dot_general(qn.astype(jnp.bfloat16), k_stack,
                                (((1,), (1,)), ((), ())),
                                preferred_element_type=jnp.float32)
        s = s + attn_b
        # Subtracting one per-row constant cancels exactly inside each per-head
        # segment softmax; it is only for exp range safety.
        p = jnp.exp(s - jnp.max(s, axis=-1, keepdims=True))
        # Segmented sum (+ broadcast within segment) via block-diag ones matmul.
        denom = jnp.dot(p.astype(jnp.bfloat16), seg_ones,
                        preferred_element_type=jnp.float32)
        p = p * pl.reciprocal(denom, approx=True)

        # p @ v_stack combines all heads straight into the (BS, D) lane layout.
        attn = jnp.dot(p.astype(jnp.bfloat16), v_stack,
                       preferred_element_type=jnp.float32)        # (BS, D)
        x = x + jnp.dot(attn.astype(jnp.bfloat16), wo_ref[l],
                        preferred_element_type=jnp.float32)

        # ---- pre-norm gated FFN block (SwiGLU) ----
        h2 = _layernorm(x, ln2w, ln2b)
        g1 = jnp.dot(h2.astype(jnp.bfloat16), wg1_ref[l],
                     preferred_element_type=jnp.float32)          # (BS, 2*D_FF)
        g = g1[:, :D_FF]                    # split exactly at lane 128 boundary
        u = g1[:, D_FF:]
        gated = g * jax.nn.sigmoid(g) * u   # silu(gate) * fc1
        x = x + jnp.dot(gated.astype(jnp.bfloat16), wfc2_ref[l],
                        preferred_element_type=jnp.float32)

    # ---- final LayerNorm ----
    o_ref[...] = _layernorm(x, final_ref[0], final_ref[1])


# ----------------------------- wrapper ----------------------------------------
def _full_spec(shape):
    n = len(shape)
    return pl.BlockSpec(shape, lambda i, _n=n: (0,) * _n)


def pack_params(layer_params, final_w, final_b):
    # block-diagonal per-head averaging matrix (built on host, f32)
    r = np.arange(D_MODEL)[:, None] // HEAD_DIM
    c = np.arange(D_MODEL)[None, :] // HEAD_DIM
    avg_np = (r == c).astype(np.float32) / HEAD_DIM
    avg_mat = jnp.asarray(avg_np)

    def head_tile(t):                       # (1, HEAD_DIM) -> (1, D)
        return jnp.tile(t, (1, NUM_HEADS))

    w_qkv, w_o, w_g1, w_fc2, norm_rows = [], [], [], [], []
    for p in layer_params:
        wq, wk, wv = p["wq"], p["wk"], p["wv"]
        # Fold the per-head mean into the projection: extra columns directly
        # produce the q/k head means. Order [Wq|Wk|Wv|Wq_avg|Wk_avg] keeps the
        # always-needed q/k/v outputs in the first 128-lane MXU column tile (v5e).
        w_qkv.append(jnp.concatenate(
            [wq, wk, wv, wq @ avg_mat, wk @ avg_mat], axis=1))       # (D, 5D)
        w_o.append(p["wo"])
        w_g1.append(jnp.concatenate([p["w_gate"], p["w_fc1"]], axis=1))  # (D, 2*D_FF)
        w_fc2.append(p["w_fc2"])
        norm_rows.append(jnp.concatenate([
            p["ln1_w"], p["ln1_b"], p["ln2_w"], p["ln2_b"],
            head_tile(p["qn_w"]) * SCALE, head_tile(p["qn_b"]) * SCALE,  # fold softmax scale
            head_tile(p["kn_w"]), head_tile(p["kn_b"]),
        ], axis=0))                                                  # (8, D)

    # matmul operands in bf16 (f32 accumulation happens in-kernel)
    w_qkv = jnp.stack(w_qkv).astype(jnp.bfloat16)                    # (L, D, 5D)
    w_o = jnp.stack(w_o).astype(jnp.bfloat16)                        # (L, D, D)
    w_g1 = jnp.stack(w_g1).astype(jnp.bfloat16)                      # (L, D, 2*D_FF)
    w_fc2 = jnp.stack(w_fc2).astype(jnp.bfloat16)                    # (L, D_FF, D)

    # Pre-broadcast norm params to (BS, D): no in-kernel broadcast_in_dim.
    norms = jnp.broadcast_to(jnp.stack(norm_rows)[:, :, None, :],
                             (NUM_LAYERS, 8, BS, D_MODEL)).astype(jnp.float32)
    final_ln = jnp.broadcast_to(
        jnp.concatenate([final_w, final_b], axis=0)[:, None, :],
        (2, BS, D_MODEL)).astype(jnp.float32)

    # Small constant operands, built once on host (no in-kernel iota/where).
    avg_bf16 = avg_mat.astype(jnp.bfloat16)                          # (D, D)
    rh = np.arange(HBS)[:, None] // BS
    ch = np.arange(D_MODEL)[None, :] // HEAD_DIM
    stack_mask = jnp.asarray((rh == ch).astype(np.float32))          # (HBS, D)
    rb = np.arange(BS)[:, None] // SEQ
    cb = (np.arange(HBS)[None, :] % BS) // SEQ
    attn_bias = jnp.asarray(
        np.where(rb == cb, 0.0, -1e30).astype(np.float32))           # (BS, HBS)
    rs = np.arange(HBS)[:, None] // BS
    cs = np.arange(HBS)[None, :] // BS
    seg_ones = jnp.asarray((rs == cs).astype(np.float32)).astype(jnp.bfloat16)  # (HBS, HBS)

    return (w_qkv, w_o, w_g1, w_fc2, norms, final_ln,
            avg_bf16, stack_mask, attn_bias, seg_ones)


def transformer_encoder(x, layer_params, final_w, final_b):
    B, S, D = x.shape
    xf = x.reshape(B * S, D)
    packed = pack_params(layer_params, final_w, final_b)
    args = (xf,) + packed
    out = pl.pallas_call(
        encoder_kernel,
        out_shape=jax.ShapeDtypeStruct((B * S, D), jnp.float32),
        grid_spec=pltpu.PrefetchScalarGridSpec(
            num_scalar_prefetch=0,
            grid=(1,),
            in_specs=[_full_spec(a.shape) for a in args],
            out_specs=pl.BlockSpec((B * S, D), lambda i: (0, 0)),
        ),
        compiler_params=pltpu.CompilerParams(dimension_semantics=("arbitrary",)),
    )(*args)
    return out.reshape(B, S, D)


# ----------------------------- reference (pure JAX) ---------------------------
def _ref_layernorm(v, w, b):
    mu = jnp.mean(v, axis=-1, keepdims=True)
    var = jnp.mean((v - mu) ** 2, axis=-1, keepdims=True)
    return (v - mu) / jnp.sqrt(var + EPS) * w + b


def reference_encoder(x, layer_params, final_w, final_b):
    for p in layer_params:
        h = _ref_layernorm(x, p["ln1_w"], p["ln1_b"])
        q = h @ p["wq"]
        k = h @ p["wk"]
        v = h @ p["wv"]
        B, S, _ = x.shape
        q = q.reshape(B, S, NUM_HEADS, HEAD_DIM)
        k = k.reshape(B, S, NUM_HEADS, HEAD_DIM)
        v = v.reshape(B, S, NUM_HEADS, HEAD_DIM)
        q = _ref_layernorm(q, p["qn_w"][0], p["qn_b"][0])
        k = _ref_layernorm(k, p["kn_w"][0], p["kn_b"][0])
        s = jnp.einsum("bqhd,bkhd->bhqk", q, k) * SCALE
        pmat = jax.nn.softmax(s, axis=-1)
        o = jnp.einsum("bhqk,bkhd->bqhd", pmat, v).reshape(B, S, D_MODEL)
        x = x + o @ p["wo"]
        h2 = _ref_layernorm(x, p["ln2_w"], p["ln2_b"])
        g = h2 @ p["w_gate"]
        u = h2 @ p["w_fc1"]
        x = x + (jax.nn.silu(g) * u) @ p["w_fc2"]
    return _ref_layernorm(x, final_w, final_b)


# ----------------------------- deterministic params ---------------------------
def init_params(key):
    layer_params = []
    for _ in range(NUM_LAYERS):
        keys = jax.random.split(key, 16)
        key = keys[-1]
        p = {
            "ln1_w": 1.0 + 0.1 * jax.random.normal(keys[0], (1, D_MODEL), jnp.float32),
            "ln1_b": 0.1 * jax.random.normal(keys[1], (1, D_MODEL), jnp.float32),
            "wq": 0.05 * jax.random.normal(keys[2], (D_MODEL, NUM_HEADS * HEAD_DIM), jnp.float32),
            "wk": 0.05 * jax.random.normal(keys[3], (D_MODEL, NUM_GROUPS * HEAD_DIM), jnp.float32),
            "wv": 0.05 * jax.random.normal(keys[4], (D_MODEL, NUM_GROUPS * HEAD_DIM), jnp.float32),
            "qn_w": 1.0 + 0.1 * jax.random.normal(keys[5], (1, HEAD_DIM), jnp.float32),
            "qn_b": 0.1 * jax.random.normal(keys[6], (1, HEAD_DIM), jnp.float32),
            "kn_w": 1.0 + 0.1 * jax.random.normal(keys[7], (1, HEAD_DIM), jnp.float32),
            "kn_b": 0.1 * jax.random.normal(keys[8], (1, HEAD_DIM), jnp.float32),
            "wo": 0.05 * jax.random.normal(keys[9], (D_MODEL, D_MODEL), jnp.float32),
            "ln2_w": 1.0 + 0.1 * jax.random.normal(keys[10], (1, D_MODEL), jnp.float32),
            "ln2_b": 0.1 * jax.random.normal(keys[11], (1, D_MODEL), jnp.float32),
            "w_gate": 0.05 * jax.random.normal(keys[12], (D_MODEL, D_FF), jnp.float32),
            "w_fc1": 0.05 * jax.random.normal(keys[13], (D_MODEL, D_FF), jnp.float32),
            "w_fc2": 0.05 * jax.random.normal(keys[14], (D_FF, D_MODEL), jnp.float32),
        }
        layer_params.append(p)
    kf1, kf2 = jax.random.split(key)
    final_w = 1.0 + 0.1 * jax.random.normal(kf1, (1, D_MODEL), jnp.float32)
    final_b = 0.1 * jax.random.normal(kf2, (1, D_MODEL), jnp.float32)
    return layer_params, final_w, final_b


# ----------------------------- main -------------------------------------------
if __name__ == "__main__":
    key = jax.random.PRNGKey(0)
    kx, kp = jax.random.split(key)
    x = jax.random.normal(kx, (BATCH, SEQ, D_MODEL), jnp.float32)
    layer_params, final_w, final_b = init_params(kp)

    out = transformer_encoder(x, layer_params, final_w, final_b)
    out = jax.block_until_ready(out)

    ref = reference_encoder(x, layer_params, final_w, final_b)
    # Tolerance relaxed for bf16 MXU operands (per perf feedback) and the
    # approx-reciprocal softmax denominator; math is otherwise identical.
    np.testing.assert_allclose(np.asarray(out), np.asarray(ref), rtol=1e-2, atol=1e-2)

    print("KERNEL_OK")
</pallas_src>

<mosaic_0001>
module attributes {stable_mosaic.version = 11 : i64} {
  func.func @encoder_kernel(%arg0: i32, %arg1: memref<16x32xf32, #tpu.memory_space<vmem>>, %arg2: memref<2x32x160xbf16, #tpu.memory_space<vmem>>, %arg3: memref<2x32x32xbf16, #tpu.memory_space<vmem>>, %arg4: memref<2x32x256xbf16, #tpu.memory_space<vmem>>, %arg5: memref<2x128x32xbf16, #tpu.memory_space<vmem>>, %arg6: memref<2x8x16x32xf32, #tpu.memory_space<vmem>>, %arg7: memref<2x16x32xf32, #tpu.memory_space<vmem>>, %arg8: memref<32x32xbf16, #tpu.memory_space<vmem>>, %arg9: memref<64x32xf32, #tpu.memory_space<vmem>>, %arg10: memref<16x64xf32, #tpu.memory_space<vmem>>, %arg11: memref<64x64xbf16, #tpu.memory_space<vmem>>, %arg12: memref<16x32xf32, #tpu.memory_space<vmem>>) attributes {dimension_semantics = [#tpu.dimension_semantics<arbitrary>], iteration_bounds = array<i64: 1>, scalar_prefetch = 0 : i64, scratch_operands = 0 : i64, tpu.core_type = #tpu.core_type<tc>, window_params = [{pipeline_mode = #tpu.pipeline_mode<synchronous>, transform_indices = @transform_0, window_bounds = array<i64: 16, 32>}, {pipeline_mode = #tpu.pipeline_mode<synchronous>, transform_indices = @transform_1, window_bounds = array<i64: 2, 32, 160>}, {pipeline_mode = #tpu.pipeline_mode<synchronous>, transform_indices = @transform_2, window_bounds = array<i64: 2, 32, 32>}, {pipeline_mode = #tpu.pipeline_mode<synchronous>, transform_indices = @transform_3, window_bounds = array<i64: 2, 32, 256>}, {pipeline_mode = #tpu.pipeline_mode<synchronous>, transform_indices = @transform_4, window_bounds = array<i64: 2, 128, 32>}, {pipeline_mode = #tpu.pipeline_mode<synchronous>, transform_indices = @transform_5, window_bounds = array<i64: 2, 8, 16, 32>}, {pipeline_mode = #tpu.pipeline_mode<synchronous>, transform_indices = @transform_6, window_bounds = array<i64: 2, 16, 32>}, {pipeline_mode = #tpu.pipeline_mode<synchronous>, transform_indices = @transform_7, window_bounds = array<i64: 32, 32>}, {pipeline_mode = #tpu.pipeline_mode<synchronous>, transform_indices = @transform_8, window_bounds = array<i64: 64, 32>}, {pipeline_mode = #tpu.pipeline_mode<synchronous>, transform_indices = @transform_9, window_bounds = array<i64: 16, 64>}, {pipeline_mode = #tpu.pipeline_mode<synchronous>, transform_indices = @transform_10, window_bounds = array<i64: 64, 64>}, {pipeline_mode = #tpu.pipeline_mode<synchronous>, transform_indices = @transform_11, window_bounds = array<i64: 16, 32>}]} {
    %c0 = arith.constant 0 : index
    %c0_0 = arith.constant 0 : index
    %0 = vector.load %arg1[%c0, %c0_0] : memref<16x32xf32, #tpu.memory_space<vmem>>, vector<16x32xf32>
    %c0_1 = arith.constant 0 : index
    %c0_2 = arith.constant 0 : index
    %1 = vector.load %arg8[%c0_1, %c0_2] : memref<32x32xbf16, #tpu.memory_space<vmem>>, vector<32x32xbf16>
    %c0_3 = arith.constant 0 : index
    %c0_4 = arith.constant 0 : index
    %2 = vector.load %arg9[%c0_3, %c0_4] : memref<64x32xf32, #tpu.memory_space<vmem>>, vector<64x32xf32>
    %c0_5 = arith.constant 0 : index
    %c0_6 = arith.constant 0 : index
    %3 = vector.load %arg10[%c0_5, %c0_6] : memref<16x64xf32, #tpu.memory_space<vmem>>, vector<16x64xf32>
    %c0_7 = arith.constant 0 : index
    %c0_8 = arith.constant 0 : index
    %4 = vector.load %arg11[%c0_7, %c0_8] : memref<64x64xbf16, #tpu.memory_space<vmem>>, vector<64x64xbf16>
    %c0_9 = arith.constant 0 : index
    %c0_10 = arith.constant 0 : index
    %c0_11 = arith.constant 0 : index
    %c0_12 = arith.constant 0 : index
    %5 = vector.load %arg6[%c0_9, %c0_10, %c0_11, %c0_12] : memref<2x8x16x32xf32, #tpu.memory_space<vmem>>, vector<1x1x16x32xf32>
    %6 = vector.shape_cast %5 : vector<1x1x16x32xf32> to vector<16x32xf32>
    %c0_13 = arith.constant 0 : index
    %c1 = arith.constant 1 : index
    %c0_14 = arith.constant 0 : index
    %c0_15 = arith.constant 0 : index
    %7 = vector.load %arg6[%c0_13, %c1, %c0_14, %c0_15] : memref<2x8x16x32xf32, #tpu.memory_space<vmem>>, vector<1x1x16x32xf32>
    %8 = vector.shape_cast %7 : vector<1x1x16x32xf32> to vector<16x32xf32>
    %c0_16 = arith.constant 0 : index
    %c2 = arith.constant 2 : index
    %c0_17 = arith.constant 0 : index
    %c0_18 = arith.constant 0 : index
    %9 = vector.load %arg6[%c0_16, %c2, %c0_17, %c0_18] : memref<2x8x16x32xf32, #tpu.memory_space<vmem>>, vector<1x1x16x32xf32>
    %10 = vector.shape_cast %9 : vector<1x1x16x32xf32> to vector<16x32xf32>
    %c0_19 = arith.constant 0 : index
    %c3 = arith.constant 3 : index
    %c0_20 = arith.constant 0 : index
    %c0_21 = arith.constant 0 : index
    %11 = vector.load %arg6[%c0_19, %c3, %c0_20, %c0_21] : memref<2x8x16x32xf32, #tpu.memory_space<vmem>>, vector<1x1x16x32xf32>
    %12 = vector.shape_cast %11 : vector<1x1x16x32xf32> to vector<16x32xf32>
    %c0_22 = arith.constant 0 : index
    %c4 = arith.constant 4 : index
    %c0_23 = arith.constant 0 : index
    %c0_24 = arith.constant 0 : index
    %13 = vector.load %arg6[%c0_22, %c4, %c0_23, %c0_24] : memref<2x8x16x32xf32, #tpu.memory_space<vmem>>, vector<1x1x16x32xf32>
    %14 = vector.shape_cast %13 : vector<1x1x16x32xf32> to vector<16x32xf32>
    %c0_25 = arith.constant 0 : index
    %c5 = arith.constant 5 : index
    %c0_26 = arith.constant 0 : index
    %c0_27 = arith.constant 0 : index
    %15 = vector.load %arg6[%c0_25, %c5, %c0_26, %c0_27] : memref<2x8x16x32xf32, #tpu.memory_space<vmem>>, vector<1x1x16x32xf32>
    %16 = vector.shape_cast %15 : vector<1x1x16x32xf32> to vector<16x32xf32>
    %c0_28 = arith.constant 0 : index
    %c6 = arith.constant 6 : index
    %c0_29 = arith.constant 0 : index
    %c0_30 = arith.constant 0 : index
    %17 = vector.load %arg6[%c0_28, %c6, %c0_29, %c0_30] : memref<2x8x16x32xf32, #tpu.memory_space<vmem>>, vector<1x1x16x32xf32>
    %18 = vector.shape_cast %17 : vector<1x1x16x32xf32> to vector<16x32xf32>
    %c0_31 = arith.constant 0 : index
    %c7 = arith.constant 7 : index
    %c0_32 = arith.constant 0 : index
    %c0_33 = arith.constant 0 : index
    %19 = vector.load %arg6[%c0_31, %c7, %c0_32, %c0_33] : memref<2x8x16x32xf32, #tpu.memory_space<vmem>>, vector<1x1x16x32xf32>
    %20 = vector.shape_cast %19 : vector<1x1x16x32xf32> to vector<16x32xf32>
    %cst = arith.constant dense<0.000000e+00> : vector<16xf32>
    %21 = vector.multi_reduction <add>, %0, %cst [1] : vector<16x32xf32> to vector<16xf32>
    %22 = vector.shape_cast %21 : vector<16xf32> to vector<16x1xf32>
    %cst_34 = arith.constant 3.200000e+01 : f32
    %23 = vector.broadcast %cst_34 : f32 to vector<16x1xf32>
    %24 = arith.divf %22, %23 : vector<16x1xf32>
    %25 = vector.broadcast %24 : vector<16x1xf32> to vector<16x32xf32>
    %26 = arith.subf %0, %25 : vector<16x32xf32>
    %27 = arith.mulf %26, %26 : vector<16x32xf32>
    %cst_35 = arith.constant dense<0.000000e+00> : vector<16xf32>
    %28 = vector.multi_reduction <add>, %27, %cst_35 [1] : vector<16x32xf32> to vector<16xf32>
    %29 = vector.shape_cast %28 : vector<16xf32> to vector<16x1xf32>
    %cst_36 = arith.constant 3.200000e+01 : f32
    %30 = vector.broadcast %cst_36 : f32 to vector<16x1xf32>
    %31 = arith.divf %29, %30 : vector<16x1xf32>
    %32 = vector.broadcast %24 : vector<16x1xf32> to vector<16x32xf32>
    %33 = arith.subf %0, %32 : vector<16x32xf32>
    %cst_37 = arith.constant 9.99999974E-6 : f32
    %34 = vector.broadcast %cst_37 : f32 to vector<16x1xf32>
    %35 = arith.addf %31, %34 : vector<16x1xf32>
    %36 = math.rsqrt %35 : vector<16x1xf32>
    %37 = vector.broadcast %36 : vector<16x1xf32> to vector<16x32xf32>
    %38 = arith.mulf %33, %37 : vector<16x32xf32>
    %39 = arith.mulf %38, %6 : vector<16x32xf32>
    %40 = arith.addf %39, %8 : vector<16x32xf32>
    %41 = arith.truncf %40 : vector<16x32xf32> to vector<16x32xbf16>
    %c0_38 = arith.constant 0 : index
    %c0_39 = arith.constant 0 : index
    %c0_40 = arith.constant 0 : index
    %42 = vector.load %arg2[%c0_38, %c0_39, %c0_40] : memref<2x32x160xbf16, #tpu.memory_space<vmem>>, vector<1x32x160xbf16>
    %43 = vector.shape_cast %42 : vector<1x32x160xbf16> to vector<32x160xbf16>
    %cst_41 = arith.constant dense<0.000000e+00> : vector<16x160xf32>
    %44 = tpu.matmul %41, %43, %cst_41 {dimension_numbers = #tpu.dot_dimension_numbers<[1], [0], [0], [1], [0, 0, 1, 1], [], []>} : vector<16x32xbf16>, vector<32x160xbf16>, vector<16x160xf32> -> vector<16x160xf32>
    %45 = vector.extract_strided_slice %44 {offsets = [0, 0], sizes = [16, 32], strides = [1, 1]} : vector<16x160xf32> to vector<16x32xf32>
    %46 = vector.extract_strided_slice %44 {offsets = [0, 32], sizes = [16, 32], strides = [1, 1]} : vector<16x160xf32> to vector<16x32xf32>
    %47 = vector.extract_strided_slice %44 {offsets = [0, 64], sizes = [16, 32], strides = [1, 1]} : vector<16x160xf32> to vector<16x32xf32>
    %48 = vector.extract_strided_slice %44 {offsets = [0, 96], sizes = [16, 32], strides = [1, 1]} : vector<16x160xf32> to vector<16x32xf32>
    %49 = vector.extract_strided_slice %44 {offsets = [0, 128], sizes = [16, 32], strides = [1, 1]} : vector<16x160xf32> to vector<16x32xf32>
    %50 = arith.subf %45, %48 : vector<16x32xf32>
    %51 = arith.mulf %50, %50 : vector<16x32xf32>
    %52 = arith.truncf %51 : vector<16x32xf32> to vector<16x32xbf16>
    %cst_42 = arith.constant dense<0.000000e+00> : vector<16x32xf32>
    %53 = tpu.matmul %52, %1, %cst_42 {dimension_numbers = #tpu.dot_dimension_numbers<[1], [0], [0], [1], [0, 0, 1, 1], [], []>} : vector<16x32xbf16>, vector<32x32xbf16>, vector<16x32xf32> -> vector<16x32xf32>
    %cst_43 = arith.constant 9.99999974E-6 : f32
    %54 = vector.broadcast %cst_43 : f32 to vector<16x32xf32>
    %55 = arith.addf %53, %54 : vector<16x32xf32>
    %56 = math.rsqrt %55 : vector<16x32xf32>
    %57 = arith.mulf %50, %56 : vector<16x32xf32>
    %58 = arith.mulf %57, %14 : vector<16x32xf32>
    %59 = arith.addf %58, %16 : vector<16x32xf32>
    %60 = arith.subf %46, %49 : vector<16x32xf32>
    %61 = arith.mulf %60, %60 : vector<16x32xf32>
    %62 = arith.truncf %61 : vector<16x32xf32> to vector<16x32xbf16>
    %cst_44 = arith.constant dense<0.000000e+00> : vector<16x32xf32>
    %63 = tpu.matmul %62, %1, %cst_44 {dimension_numbers = #tpu.dot_dimension_numbers<[1], [0], [0], [1], [0, 0, 1, 1], [], []>} : vector<16x32xbf16>, vector<32x32xbf16>, vector<16x32xf32> -> vector<16x32xf32>
    %cst_45 = arith.constant 9.99999974E-6 : f32
    %64 = vector.broadcast %cst_45 : f32 to vector<16x32xf32>
    %65 = arith.addf %63, %64 : vector<16x32xf32>
    %66 = math.rsqrt %65 : vector<16x32xf32>
    %67 = arith.mulf %60, %66 : vector<16x32xf32>
    %68 = arith.mulf %67, %18 : vector<16x32xf32>
    %69 = arith.addf %68, %20 : vector<16x32xf32>
    %70 = tpu.concatenate %69, %69, %69, %69 in 0 : vector<16x32xf32>, vector<16x32xf32>, vector<16x32xf32>, vector<16x32xf32> -> vector<64x32xf32>
    %71 = arith.mulf %70, %2 : vector<64x32xf32>
    %72 = arith.truncf %71 : vector<64x32xf32> to vector<64x32xbf16>
    %73 = tpu.concatenate %47, %47, %47, %47 in 0 : vector<16x32xf32>, vector<16x32xf32>, vector<16x32xf32>, vector<16x32xf32> -> vector<64x32xf32>
    %74 = arith.mulf %73, %2 : vector<64x32xf32>
    %75 = arith.truncf %74 : vector<64x32xf32> to vector<64x32xbf16>
    %76 = arith.truncf %59 : vector<16x32xf32> to vector<16x32xbf16>
    %cst_46 = arith.constant dense<0.000000e+00> : vector<16x64xf32>
    %77 = tpu.matmul %76, %72, %cst_46 {dimension_numbers = #tpu.dot_dimension_numbers<[1], [1], [0], [0], [0, 0, 1, 0], [], []>} : vector<16x32xbf16>, vector<64x32xbf16>, vector<16x64xf32> -> vector<16x64xf32>
    %78 = arith.addf %77, %3 : vector<16x64xf32>
    %cst_47 = arith.constant dense<0xFF800000> : vector<16xf32>
    %79 = vector.multi_reduction <maximumf>, %78, %cst_47 [1] : vector<16x64xf32> to vector<16xf32>
    %80 = vector.shape_cast %79 : vector<16xf32> to vector<16x1xf32>
    %81 = vector.broadcast %80 : vector<16x1xf32> to vector<16x64xf32>
    %82 = arith.subf %78, %81 : vector<16x64xf32>
    %83 = math.exp %82 : vector<16x64xf32>
    %84 = arith.truncf %83 : vector<16x64xf32> to vector<16x64xbf16>
    %cst_48 = arith.constant dense<0.000000e+00> : vector<16x64xf32>
    %85 = tpu.matmul %84, %4, %cst_48 {dimension_numbers = #tpu.dot_dimension_numbers<[1], [0], [0], [1], [0, 0, 1, 1], [], []>} : vector<16x64xbf16>, vector<64x64xbf16>, vector<16x64xf32> -> vector<16x64xf32>
    %86 = tpu.reciprocal %85 {approx = true} : vector<16x64xf32> -> vector<16x64xf32>
    %87 = arith.mulf %83, %86 : vector<16x64xf32>
    %88 = arith.truncf %87 : vector<16x64xf32> to vector<16x64xbf16>
    %cst_49 = arith.constant dense<0.000000e+00> : vector<16x32xf32>
    %89 = tpu.matmul %88, %75, %cst_49 {dimension_numbers = #tpu.dot_dimension_numbers<[1], [0], [0], [1], [0, 0, 1, 1], [], []>} : vector<16x64xbf16>, vector<64x32xbf16>, vector<16x32xf32> -> vector<16x32xf32>
    %90 = arith.truncf %89 : vector<16x32xf32> to vector<16x32xbf16>
    %c0_50 = arith.constant 0 : index
    %c0_51 = arith.constant 0 : index
    %c0_52 = arith.constant 0 : index
    %91 = vector.load %arg3[%c0_50, %c0_51, %c0_52] : memref<2x32x32xbf16, #tpu.memory_space<vmem>>, vector<1x32x32xbf16>
    %92 = vector.shape_cast %91 : vector<1x32x32xbf16> to vector<32x32xbf16>
    %cst_53 = arith.constant dense<0.000000e+00> : vector<16x32xf32>
    %93 = tpu.matmul %90, %92, %cst_53 {dimension_numbers = #tpu.dot_dimension_numbers<[1], [0], [0], [1], [0, 0, 1, 1], [], []>} : vector<16x32xbf16>, vector<32x32xbf16>, vector<16x32xf32> -> vector<16x32xf32>
    %94 = arith.addf %0, %93 : vector<16x32xf32>
    %cst_54 = arith.constant dense<0.000000e+00> : vector<16xf32>
    %95 = vector.multi_reduction <add>, %94, %cst_54 [1] : vector<16x32xf32> to vector<16xf32>
    %96 = vector.shape_cast %95 : vector<16xf32> to vector<16x1xf32>
    %cst_55 = arith.constant 3.200000e+01 : f32
    %97 = vector.broadcast %cst_55 : f32 to vector<16x1xf32>
    %98 = arith.divf %96, %97 : vector<16x1xf32>
    %99 = vector.broadcast %98 : vector<16x1xf32> to vector<16x32xf32>
    %100 = arith.subf %94, %99 : vector<16x32xf32>
    %101 = arith.mulf %100, %100 : vector<16x32xf32>
    %cst_56 = arith.constant dense<0.000000e+00> : vector<16xf32>
    %102 = vector.multi_reduction <add>, %101, %cst_56 [1] : vector<16x32xf32> to vector<16xf32>
    %103 = vector.shape_cast %102 : vector<16xf32> to vector<16x1xf32>
    %cst_57 = arith.constant 3.200000e+01 : f32
    %104 = vector.broadcast %cst_57 : f32 to vector<16x1xf32>
    %105 = arith.divf %103, %104 : vector<16x1xf32>
    %106 = vector.broadcast %98 : vector<16x1xf32> to vector<16x32xf32>
    %107 = arith.subf %94, %106 : vector<16x32xf32>
    %cst_58 = arith.constant 9.99999974E-6 : f32
    %108 = vector.broadcast %cst_58 : f32 to vector<16x1xf32>
    %109 = arith.addf %105, %108 : vector<16x1xf32>
    %110 = math.rsqrt %109 : vector<16x1xf32>
    %111 = vector.broadcast %110 : vector<16x1xf32> to vector<16x32xf32>
    %112 = arith.mulf %107, %111 : vector<16x32xf32>
    %113 = arith.mulf %112, %10 : vector<16x32xf32>
    %114 = arith.addf %113, %12 : vector<16x32xf32>
    %115 = arith.truncf %114 : vector<16x32xf32> to vector<16x32xbf16>
    %c0_59 = arith.constant 0 : index
    %c0_60 = arith.constant 0 : index
    %c0_61 = arith.constant 0 : index
    %116 = vector.load %arg4[%c0_59, %c0_60, %c0_61] : memref<2x32x256xbf16, #tpu.memory_space<vmem>>, vector<1x32x256xbf16>
    %117 = vector.shape_cast %116 : vector<1x32x256xbf16> to vector<32x256xbf16>
    %cst_62 = arith.constant dense<0.000000e+00> : vector<16x256xf32>
    %118 = tpu.matmul %115, %117, %cst_62 {dimension_numbers = #tpu.dot_dimension_numbers<[1], [0], [0], [1], [0, 0, 1, 1], [], []>} : vector<16x32xbf16>, vector<32x256xbf16>, vector<16x256xf32> -> vector<16x256xf32>
    %119 = vector.extract_strided_slice %118 {offsets = [0, 0], sizes = [16, 128], strides = [1, 1]} : vector<16x256xf32> to vector<16x128xf32>
    %120 = vector.extract_strided_slice %118 {offsets = [0, 128], sizes = [16, 128], strides = [1, 1]} : vector<16x256xf32> to vector<16x128xf32>
    %121 = arith.negf %119 : vector<16x128xf32>
    %122 = math.exp %121 : vector<16x128xf32>
    %cst_63 = arith.constant 1.000000e+00 : f32
    %123 = vector.broadcast %cst_63 : f32 to vector<16x128xf32>
    %124 = arith.addf %123, %122 : vector<16x128xf32>
    %125 = arith.divf %123, %124 : vector<16x128xf32>
    %126 = arith.mulf %119, %125 : vector<16x128xf32>
    %127 = arith.mulf %126, %120 : vector<16x128xf32>
    %128 = arith.truncf %127 : vector<16x128xf32> to vector<16x128xbf16>
    %c0_64 = arith.constant 0 : index
    %c0_65 = arith.constant 0 : index
    %c0_66 = arith.constant 0 : index
    %129 = vector.load %arg5[%c0_64, %c0_65, %c0_66] : memref<2x128x32xbf16, #tpu.memory_space<vmem>>, vector<1x128x32xbf16>
    %130 = vector.shape_cast %129 : vector<1x128x32xbf16> to vector<128x32xbf16>
    %cst_67 = arith.constant dense<0.000000e+00> : vector<16x32xf32>
    %131 = tpu.matmul %128, %130, %cst_67 {dimension_numbers = #tpu.dot_dimension_numbers<[1], [0], [0], [1], [0, 0, 1, 1], [], []>} : vector<16x128xbf16>, vector<128x32xbf16>, vector<16x32xf32> -> vector<16x32xf32>
    %132 = arith.addf %94, %131 : vector<16x32xf32>
    %c1_68 = arith.constant 1 : index
    %c0_69 = arith.constant 0 : index
    %c0_70 = arith.constant 0 : index
    %c0_71 = arith.constant 0 : index
    %133 = vector.load %arg6[%c1_68, %c0_69, %c0_70, %c0_71] : memref<2x8x16x32xf32, #tpu.memory_space<vmem>>, vector<1x1x16x32xf32>
    %134 = vector.shape_cast %133 : vector<1x1x16x32xf32> to vector<16x32xf32>
    %c1_72 = arith.constant 1 : index
    %c1_73 = arith.constant 1 : index
    %c0_74 = arith.constant 0 : index
    %c0_75 = arith.constant 0 : index
    %135 = vector.load %arg6[%c1_72, %c1_73, %c0_74, %c0_75] : memref<2x8x16x32xf32, #tpu.memory_space<vmem>>, vector<1x1x16x32xf32>
    %136 = vector.shape_cast %135 : vector<1x1x16x32xf32> to vector<16x32xf32>
    %c1_76 = arith.constant 1 : index
    %c2_77 = arith.constant 2 : index
    %c0_78 = arith.constant 0 : index
    %c0_79 = arith.constant 0 : index
    %137 = vector.load %arg6[%c1_76, %c2_77, %c0_78, %c0_79] : memref<2x8x16x32xf32, #tpu.memory_space<vmem>>, vector<1x1x16x32xf32>
    %138 = vector.shape_cast %137 : vector<1x1x16x32xf32> to vector<16x32xf32>
    %c1_80 = arith.constant 1 : index
    %c3_81 = arith.constant 3 : index
    %c0_82 = arith.constant 0 : index
    %c0_83 = arith.constant 0 : index
    %139 = vector.load %arg6[%c1_80, %c3_81, %c0_82, %c0_83] : memref<2x8x16x32xf32, #tpu.memory_space<vmem>>, vector<1x1x16x32xf32>
    %140 = vector.shape_cast %139 : vector<1x1x16x32xf32> to vector<16x32xf32>
    %c1_84 = arith.constant 1 : index
    %c4_85 = arith.constant 4 : index
    %c0_86 = arith.constant 0 : index
    %c0_87 = arith.constant 0 : index
    %141 = vector.load %arg6[%c1_84, %c4_85, %c0_86, %c0_87] : memref<2x8x16x32xf32, #tpu.memory_space<vmem>>, vector<1x1x16x32xf32>
    %142 = vector.shape_cast %141 : vector<1x1x16x32xf32> to vector<16x32xf32>
    %c1_88 = arith.constant 1 : index
    %c5_89 = arith.constant 5 : index
    %c0_90 = arith.constant 0 : index
    %c0_91 = arith.constant 0 : index
    %143 = vector.load %arg6[%c1_88, %c5_89, %c0_90, %c0_91] : memref<2x8x16x32xf32, #tpu.memory_space<vmem>>, vector<1x1x16x32xf32>
    %144 = vector.shape_cast %143 : vector<1x1x16x32xf32> to vector<16x32xf32>
    %c1_92 = arith.constant 1 : index
    %c6_93 = arith.constant 6 : index
    %c0_94 = arith.constant 0 : index
    %c0_95 = arith.constant 0 : index
    %145 = vector.load %arg6[%c1_92, %c6_93, %c0_94, %c0_95] : memref<2x8x16x32xf32, #tpu.memory_space<vmem>>, vector<1x1x16x32xf32>
    %146 = vector.shape_cast %145 : vector<1x1x16x32xf32> to vector<16x32xf32>
    %c1_96 = arith.constant 1 : index
    %c7_97 = arith.constant 7 : index
    %c0_98 = arith.constant 0 : index
    %c0_99 = arith.constant 0 : index
    %147 = vector.load %arg6[%c1_96, %c7_97, %c0_98, %c0_99] : memref<2x8x16x32xf32, #tpu.memory_space<vmem>>, vector<1x1x16x32xf32>
    %148 = vector.shape_cast %147 : vector<1x1x16x32xf32> to vector<16x32xf32>
    %cst_100 = arith.constant dense<0.000000e+00> : vector<16xf32>
    %149 = vector.multi_reduction <add>, %132, %cst_100 [1] : vector<16x32xf32> to vector<16xf32>
    %150 = vector.shape_cast %149 : vector<16xf32> to vector<16x1xf32>
    %cst_101 = arith.constant 3.200000e+01 : f32
    %151 = vector.broadcast %cst_101 : f32 to vector<16x1xf32>
    %152 = arith.divf %150, %151 : vector<16x1xf32>
    %153 = vector.broadcast %152 : vector<16x1xf32> to vector<16x32xf32>
    %154 = arith.subf %132, %153 : vector<16x32xf32>
    %155 = arith.mulf %154, %154 : vector<16x32xf32>
    %cst_102 = arith.constant dense<0.000000e+00> : vector<16xf32>
    %156 = vector.multi_reduction <add>, %155, %cst_102 [1] : vector<16x32xf32> to vector<16xf32>
    %157 = vector.shape_cast %156 : vector<16xf32> to vector<16x1xf32>
    %cst_103 = arith.constant 3.200000e+01 : f32
    %158 = vector.broadcast %cst_103 : f32 to vector<16x1xf32>
    %159 = arith.divf %157, %158 : vector<16x1xf32>
    %160 = vector.broadcast %152 : vector<16x1xf32> to vector<16x32xf32>
    %161 = arith.subf %132, %160 : vector<16x32xf32>
    %cst_104 = arith.constant 9.99999974E-6 : f32
    %162 = vector.broadcast %cst_104 : f32 to vector<16x1xf32>
    %163 = arith.addf %159, %162 : vector<16x1xf32>
    %164 = math.rsqrt %163 : vector<16x1xf32>
    %165 = vector.broadcast %164 : vector<16x1xf32> to vector<16x32xf32>
    %166 = arith.mulf %161, %165 : vector<16x32xf32>
    %167 = arith.mulf %166, %134 : vector<16x32xf32>
    %168 = arith.addf %167, %136 : vector<16x32xf32>
    %169 = arith.truncf %168 : vector<16x32xf32> to vector<16x32xbf16>
    %c1_105 = arith.constant 1 : index
    %c0_106 = arith.constant 0 : index
    %c0_107 = arith.constant 0 : index
    %170 = vector.load %arg2[%c1_105, %c0_106, %c0_107] : memref<2x32x160xbf16, #tpu.memory_space<vmem>>, vector<1x32x160xbf16>
    %171 = vector.shape_cast %170 : vector<1x32x160xbf16> to vector<32x160xbf16>
    %cst_108 = arith.constant dense<0.000000e+00> : vector<16x160xf32>
    %172 = tpu.matmul %169, %171, %cst_108 {dimension_numbers = #tpu.dot_dimension_numbers<[1], [0], [0], [1], [0, 0, 1, 1], [], []>} : vector<16x32xbf16>, vector<32x160xbf16>, vector<16x160xf32> -> vector<16x160xf32>
    %173 = vector.extract_strided_slice %172 {offsets = [0, 0], sizes = [16, 32], strides = [1, 1]} : vector<16x160xf32> to vector<16x32xf32>
    %174 = vector.extract_strided_slice %172 {offsets = [0, 32], sizes = [16, 32], strides = [1, 1]} : vector<16x160xf32> to vector<16x32xf32>
    %175 = vector.extract_strided_slice %172 {offsets = [0, 64], sizes = [16, 32], strides = [1, 1]} : vector<16x160xf32> to vector<16x32xf32>
    %176 = vector.extract_strided_slice %172 {offsets = [0, 96], sizes = [16, 32], strides = [1, 1]} : vector<16x160xf32> to vector<16x32xf32>
    %177 = vector.extract_strided_slice %172 {offsets = [0, 128], sizes = [16, 32], strides = [1, 1]} : vector<16x160xf32> to vector<16x32xf32>
    %178 = arith.subf %173, %176 : vector<16x32xf32>
    %179 = arith.mulf %178, %178 : vector<16x32xf32>
    %180 = arith.truncf %179 : vector<16x32xf32> to vector<16x32xbf16>
    %cst_109 = arith.constant dense<0.000000e+00> : vector<16x32xf32>
    %181 = tpu.matmul %180, %1, %cst_109 {dimension_numbers = #tpu.dot_dimension_numbers<[1], [0], [0], [1], [0, 0, 1, 1], [], []>} : vector<16x32xbf16>, vector<32x32xbf16>, vector<16x32xf32> -> vector<16x32xf32>
    %cst_110 = arith.constant 9.99999974E-6 : f32
    %182 = vector.broadcast %cst_110 : f32 to vector<16x32xf32>
    %183 = arith.addf %181, %182 : vector<16x32xf32>
    %184 = math.rsqrt %183 : vector<16x32xf32>
    %185 = arith.mulf %178, %184 : vector<16x32xf32>
    %186 = arith.mulf %185, %142 : vector<16x32xf32>
    %187 = arith.addf %186, %144 : vector<16x32xf32>
    %188 = arith.subf %174, %177 : vector<16x32xf32>
    %189 = arith.mulf %188, %188 : vector<16x32xf32>
    %190 = arith.truncf %189 : vector<16x32xf32> to vector<16x32xbf16>
    %cst_111 = arith.constant dense<0.000000e+00> : vector<16x32xf32>
    %191 = tpu.matmul %190, %1, %cst_111 {dimension_numbers = #tpu.dot_dimension_numbers<[1], [0], [0], [1], [0, 0, 1, 1], [], []>} : vector<16x32xbf16>, vector<32x32xbf16>, vector<16x32xf32> -> vector<16x32xf32>
    %cst_112 = arith.constant 9.99999974E-6 : f32
    %192 = vector.broadcast %cst_112 : f32 to vector<16x32xf32>
    %193 = arith.addf %191, %192 : vector<16x32xf32>
    %194 = math.rsqrt %193 : vector<16x32xf32>
    %195 = arith.mulf %188, %194 : vector<16x32xf32>
    %196 = arith.mulf %195, %146 : vector<16x32xf32>
    %197 = arith.addf %196, %148 : vector<16x32xf32>
    %198 = tpu.concatenate %197, %197, %197, %197 in 0 : vector<16x32xf32>, vector<16x32xf32>, vector<16x32xf32>, vector<16x32xf32> -> vector<64x32xf32>
    %199 = arith.mulf %198, %2 : vector<64x32xf32>
    %200 = arith.truncf %199 : vector<64x32xf32> to vector<64x32xbf16>
    %201 = tpu.concatenate %175, %175, %175, %175 in 0 : vector<16x32xf32>, vector<16x32xf32>, vector<16x32xf32>, vector<16x32xf32> -> vector<64x32xf32>
    %202 = arith.mulf %201, %2 : vector<64x32xf32>
    %203 = arith.truncf %202 : vector<64x32xf32> to vector<64x32xbf16>
    %204 = arith.truncf %187 : vector<16x32xf32> to vector<16x32xbf16>
    %cst_113 = arith.constant dense<0.000000e+00> : vector<16x64xf32>
    %205 = tpu.matmul %204, %200, %cst_113 {dimension_numbers = #tpu.dot_dimension_numbers<[1], [1], [0], [0], [0, 0, 1, 0], [], []>} : vector<16x32xbf16>, vector<64x32xbf16>, vector<16x64xf32> -> vector<16x64xf32>
    %206 = arith.addf %205, %3 : vector<16x64xf32>
    %cst_114 = arith.constant dense<0xFF800000> : vector<16xf32>
    %207 = vector.multi_reduction <maximumf>, %206, %cst_114 [1] : vector<16x64xf32> to vector<16xf32>
    %208 = vector.shape_cast %207 : vector<16xf32> to vector<16x1xf32>
    %209 = vector.broadcast %208 : vector<16x1xf32> to vector<16x64xf32>
    %210 = arith.subf %206, %209 : vector<16x64xf32>
    %211 = math.exp %210 : vector<16x64xf32>
    %212 = arith.truncf %211 : vector<16x64xf32> to vector<16x64xbf16>
    %cst_115 = arith.constant dense<0.000000e+00> : vector<16x64xf32>
    %213 = tpu.matmul %212, %4, %cst_115 {dimension_numbers = #tpu.dot_dimension_numbers<[1], [0], [0], [1], [0, 0, 1, 1], [], []>} : vector<16x64xbf16>, vector<64x64xbf16>, vector<16x64xf32> -> vector<16x64xf32>
    %214 = tpu.reciprocal %213 {approx = true} : vector<16x64xf32> -> vector<16x64xf32>
    %215 = arith.mulf %211, %214 : vector<16x64xf32>
    %216 = arith.truncf %215 : vector<16x64xf32> to vector<16x64xbf16>
    %cst_116 = arith.constant dense<0.000000e+00> : vector<16x32xf32>
    %217 = tpu.matmul %216, %203, %cst_116 {dimension_numbers = #tpu.dot_dimension_numbers<[1], [0], [0], [1], [0, 0, 1, 1], [], []>} : vector<16x64xbf16>, vector<64x32xbf16>, vector<16x32xf32> -> vector<16x32xf32>
    %218 = arith.truncf %217 : vector<16x32xf32> to vector<16x32xbf16>
    %c1_117 = arith.constant 1 : index
    %c0_118 = arith.constant 0 : index
    %c0_119 = arith.constant 0 : index
    %219 = vector.load %arg3[%c1_117, %c0_118, %c0_119] : memref<2x32x32xbf16, #tpu.memory_space<vmem>>, vector<1x32x32xbf16>
    %220 = vector.shape_cast %219 : vector<1x32x32xbf16> to vector<32x32xbf16>
    %cst_120 = arith.constant dense<0.000000e+00> : vector<16x32xf32>
    %221 = tpu.matmul %218, %220, %cst_120 {dimension_numbers = #tpu.dot_dimension_numbers<[1], [0], [0], [1], [0, 0, 1, 1], [], []>} : vector<16x32xbf16>, vector<32x32xbf16>, vector<16x32xf32> -> vector<16x32xf32>
    %222 = arith.addf %132, %221 : vector<16x32xf32>
    %cst_121 = arith.constant dense<0.000000e+00> : vector<16xf32>
    %223 = vector.multi_reduction <add>, %222, %cst_121 [1] : vector<16x32xf32> to vector<16xf32>
    %224 = vector.shape_cast %223 : vector<16xf32> to vector<16x1xf32>
    %cst_122 = arith.constant 3.200000e+01 : f32
    %225 = vector.broadcast %cst_122 : f32 to vector<16x1xf32>
    %226 = arith.divf %224, %225 : vector<16x1xf32>
    %227 = vector.broadcast %226 : vector<16x1xf32> to vector<16x32xf32>
    %228 = arith.subf %222, %227 : vector<16x32xf32>
    %229 = arith.mulf %228, %228 : vector<16x32xf32>
    %cst_123 = arith.constant dense<0.000000e+00> : vector<16xf32>
    %230 = vector.multi_reduction <add>, %229, %cst_123 [1] : vector<16x32xf32> to vector<16xf32>
    %231 = vector.shape_cast %230 : vector<16xf32> to vector<16x1xf32>
    %cst_124 = arith.constant 3.200000e+01 : f32
    %232 = vector.broadcast %cst_124 : f32 to vector<16x1xf32>
    %233 = arith.divf %231, %232 : vector<16x1xf32>
    %234 = vector.broadcast %226 : vector<16x1xf32> to vector<16x32xf32>
    %235 = arith.subf %222, %234 : vector<16x32xf32>
    %cst_125 = arith.constant 9.99999974E-6 : f32
    %236 = vector.broadcast %cst_125 : f32 to vector<16x1xf32>
    %237 = arith.addf %233, %236 : vector<16x1xf32>
    %238 = math.rsqrt %237 : vector<16x1xf32>
    %239 = vector.broadcast %238 : vector<16x1xf32> to vector<16x32xf32>
    %240 = arith.mulf %235, %239 : vector<16x32xf32>
    %241 = arith.mulf %240, %138 : vector<16x32xf32>
    %242 = arith.addf %241, %140 : vector<16x32xf32>
    %243 = arith.truncf %242 : vector<16x32xf32> to vector<16x32xbf16>
    %c1_126 = arith.constant 1 : index
    %c0_127 = arith.constant 0 : index
    %c0_128 = arith.constant 0 : index
    %244 = vector.load %arg4[%c1_126, %c0_127, %c0_128] : memref<2x32x256xbf16, #tpu.memory_space<vmem>>, vector<1x32x256xbf16>
    %245 = vector.shape_cast %244 : vector<1x32x256xbf16> to vector<32x256xbf16>
    %cst_129 = arith.constant dense<0.000000e+00> : vector<16x256xf32>
    %246 = tpu.matmul %243, %245, %cst_129 {dimension_numbers = #tpu.dot_dimension_numbers<[1], [0], [0], [1], [0, 0, 1, 1], [], []>} : vector<16x32xbf16>, vector<32x256xbf16>, vector<16x256xf32> -> vector<16x256xf32>
    %247 = vector.extract_strided_slice %246 {offsets = [0, 0], sizes = [16, 128], strides = [1, 1]} : vector<16x256xf32> to vector<16x128xf32>
    %248 = vector.extract_strided_slice %246 {offsets = [0, 128], sizes = [16, 128], strides = [1, 1]} : vector<16x256xf32> to vector<16x128xf32>
    %249 = arith.negf %247 : vector<16x128xf32>
    %250 = math.exp %249 : vector<16x128xf32>
    %cst_130 = arith.constant 1.000000e+00 : f32
    %251 = vector.broadcast %cst_130 : f32 to vector<16x128xf32>
    %252 = arith.addf %251, %250 : vector<16x128xf32>
    %253 = arith.divf %251, %252 : vector<16x128xf32>
    %254 = arith.mulf %247, %253 : vector<16x128xf32>
    %255 = arith.mulf %254, %248 : vector<16x128xf32>
    %256 = arith.truncf %255 : vector<16x128xf32> to vector<16x128xbf16>
    %c1_131 = arith.constant 1 : index
    %c0_132 = arith.constant 0 : index
    %c0_133 = arith.constant 0 : index
    %257 = vector.load %arg5[%c1_131, %c0_132, %c0_133] : memref<2x128x32xbf16, #tpu.memory_space<vmem>>, vector<1x128x32xbf16>
    %258 = vector.shape_cast %257 : vector<1x128x32xbf16> to vector<128x32xbf16>
    %cst_134 = arith.constant dense<0.000000e+00> : vector<16x32xf32>
    %259 = tpu.matmul %256, %258, %cst_134 {dimension_numbers = #tpu.dot_dimension_numbers<[1], [0], [0], [1], [0, 0, 1, 1], [], []>} : vector<16x128xbf16>, vector<128x32xbf16>, vector<16x32xf32> -> vector<16x32xf32>
    %260 = arith.addf %222, %259 : vector<16x32xf32>
    %c0_135 = arith.constant 0 : index
    %c0_136 = arith.constant 0 : index
    %c0_137 = arith.constant 0 : index
    %261 = vector.load %arg7[%c0_135, %c0_136, %c0_137] : memref<2x16x32xf32, #tpu.memory_space<vmem>>, vector<1x16x32xf32>
    %262 = vector.shape_cast %261 : vector<1x16x32xf32> to vector<16x32xf32>
    %c1_138 = arith.constant 1 : index
    %c0_139 = arith.constant 0 : index
    %c0_140 = arith.constant 0 : index
    %263 = vector.load %arg7[%c1_138, %c0_139, %c0_140] : memref<2x16x32xf32, #tpu.memory_space<vmem>>, vector<1x16x32xf32>
    %264 = vector.shape_cast %263 : vector<1x16x32xf32> to vector<16x32xf32>
    %cst_141 = arith.constant dense<0.000000e+00> : vector<16xf32>
    %265 = vector.multi_reduction <add>, %260, %cst_141 [1] : vector<16x32xf32> to vector<16xf32>
    %266 = vector.shape_cast %265 : vector<16xf32> to vector<16x1xf32>
    %cst_142 = arith.constant 3.200000e+01 : f32
    %267 = vector.broadcast %cst_142 : f32 to vector<16x1xf32>
    %268 = arith.divf %266, %267 : vector<16x1xf32>
    %269 = vector.broadcast %268 : vector<16x1xf32> to vector<16x32xf32>
    %270 = arith.subf %260, %269 : vector<16x32xf32>
    %271 = arith.mulf %270, %270 : vector<16x32xf32>
    %cst_143 = arith.constant dense<0.000000e+00> : vector<16xf32>
    %272 = vector.multi_reduction <add>, %271, %cst_143 [1] : vector<16x32xf32> to vector<16xf32>
    %273 = vector.shape_cast %272 : vector<16xf32> to vector<16x1xf32>
    %cst_144 = arith.constant 3.200000e+01 : f32
    %274 = vector.broadcast %cst_144 : f32 to vector<16x1xf32>
    %275 = arith.divf %273, %274 : vector<16x1xf32>
    %276 = vector.broadcast %268 : vector<16x1xf32> to vector<16x32xf32>
    %277 = arith.subf %260, %276 : vector<16x32xf32>
    %cst_145 = arith.constant 9.99999974E-6 : f32
    %278 = vector.broadcast %cst_145 : f32 to vector<16x1xf32>
    %279 = arith.addf %275, %278 : vector<16x1xf32>
    %280 = math.rsqrt %279 : vector<16x1xf32>
    %281 = vector.broadcast %280 : vector<16x1xf32> to vector<16x32xf32>
    %282 = arith.mulf %277, %281 : vector<16x32xf32>
    %283 = arith.mulf %282, %262 : vector<16x32xf32>
    %284 = arith.addf %283, %264 : vector<16x32xf32>
    %c0_146 = arith.constant 0 : index
    %c0_147 = arith.constant 0 : index
    %285 = vector.load %arg12[%c0_146, %c0_147] : memref<16x32xf32, #tpu.memory_space<vmem>>, vector<16x32xf32>
    tpu.vector_store %arg12[%c0_146, %c0_147], %284 {strides = array<i32>} : memref<16x32xf32, #tpu.memory_space<vmem>>, vector<16x32xf32>,
    return
  }
  func.func @transform_0(%arg0: i32) -> (i32, i32) {
    %c0_i32 = arith.constant 0 : i32
    %c0_i32_0 = arith.constant 0 : i32
    %c0_i32_1 = arith.constant 0 : i32
    return %c0_i32, %c0_i32_0 : i32, i32
  }
  func.func @transform_1(%arg0: i32) -> (i32, i32, i32) {
    %c0_i32 = arith.constant 0 : i32
    %c0_i32_0 = arith.constant 0 : i32
    %c0_i32_1 = arith.constant 0 : i32
    %c0_i32_2 = arith.constant 0 : i32
    return %c0_i32, %c0_i32_0, %c0_i32_1 : i32, i32, i32
  }
  func.func @transform_2(%arg0: i32) -> (i32, i32, i32) {
    %c0_i32 = arith.constant 0 : i32
    %c0_i32_0 = arith.constant 0 : i32
    %c0_i32_1 = arith.constant 0 : i32
    %c0_i32_2 = arith.constant 0 : i32
    return %c0_i32, %c0_i32_0, %c0_i32_1 : i32, i32, i32
  }
  func.func @transform_3(%arg0: i32) -> (i32, i32, i32) {
    %c0_i32 = arith.constant 0 : i32
    %c0_i32_0 = arith.constant 0 : i32
    %c0_i32_1 = arith.constant 0 : i32
    %c0_i32_2 = arith.constant 0 : i32
    return %c0_i32, %c0_i32_0, %c0_i32_1 : i32, i32, i32
  }
  func.func @transform_4(%arg0: i32) -> (i32, i32, i32) {
    %c0_i32 = arith.constant 0 : i32
    %c0_i32_0 = arith.constant 0 : i32
    %c0_i32_1 = arith.constant 0 : i32
    %c0_i32_2 = arith.constant 0 : i32
    return %c0_i32, %c0_i32_0, %c0_i32_1 : i32, i32, i32
  }
  func.func @transform_5(%arg0: i32) -> (i32, i32, i32, i32) {
    %c0_i32 = arith.constant 0 : i32
    %c0_i32_0 = arith.constant 0 : i32
    %c0_i32_1 = arith.constant 0 : i32
    %c0_i32_2 = arith.constant 0 : i32
    %c0_i32_3 = arith.constant 0 : i32
    return %c0_i32, %c0_i32_0, %c0_i32_1, %c0_i32_2 : i32, i32, i32, i32
  }
  func.func @transform_6(%arg0: i32) -> (i32, i32, i32) {
    %c0_i32 = arith.constant 0 : i32
    %c0_i32_0 = arith.constant 0 : i32
    %c0_i32_1 = arith.constant 0 : i32
    %c0_i32_2 = arith.constant 0 : i32
    return %c0_i32, %c0_i32_0, %c0_i32_1 : i32, i32, i32
  }
  func.func @transform_7(%arg0: i32) -> (i32, i32) {
    %c0_i32 = arith.constant 0 : i32
    %c0_i32_0 = arith.constant 0 : i32
    %c0_i32_1 = arith.constant 0 : i32
    return %c0_i32, %c0_i32_0 : i32, i32
  }
  func.func @transform_8(%arg0: i32) -> (i32, i32) {
    %c0_i32 = arith.constant 0 : i32
    %c0_i32_0 = arith.constant 0 : i32
    %c0_i32_1 = arith.constant 0 : i32
    return %c0_i32, %c0_i32_0 : i32, i32
  }
  func.func @transform_9(%arg0: i32) -> (i32, i32) {
    %c0_i32 = arith.constant 0 : i32
    %c0_i32_0 = arith.constant 0 : i32
    %c0_i32_1 = arith.constant 0 : i32
    return %c0_i32, %c0_i32_0 : i32, i32
  }
  func.func @transform_10(%arg0: i32) -> (i32, i32) {
    %c0_i32 = arith.constant 0 : i32
    %c0_i32_0 = arith.constant 0 : i32
    %c0_i32_1 = arith.constant 0 : i32
    return %c0_i32, %c0_i32_0 : i32, i32
  }
  func.func @transform_11(%arg0: i32) -> (i32, i32) {
    %c0_i32 = arith.constant 0 : i32
    %c0_i32_0 = arith.constant 0 : i32
    %c0_i32_1 = arith.constant 0 : i32
    return %c0_i32, %c0_i32_0 : i32, i32
  }
}

</mosaic_0001>

<bundles_post_ra>
// kernel: tpu_custom_call.1
= control target key start
LH: loop header
LB: loop body
LE: loop exit
PB: predicated region body
PF: predicated region fallthrough
CT: control target
= control target key end

     0   :  { %16 = vsyncpa [#allocation3], 0  ;;  %s2774_s0 = inlined_call_operand.hbm [shape: f32[16,32], index: 0, kind: input, shape index: {}]   ;;  %s2775_s1 = inlined_call_operand.vmem [shape: bf16[2,32,160], index: 1, kind: input, shape index: {}]   ;;  %s2776_s2 = inlined_call_operand.vmem [shape: bf16[2,32,32], index: 2, kind: input, shape index: {}]   ;;  %s2777_s3 = inlined_call_operand.vmem [shape: bf16[2,32,256], index: 3, kind: input, shape index: {}]   ;;  %s2778_s4 = inlined_call_operand.vmem [shape: bf16[2,128,32], index: 4, kind: input, shape index: {}]   ;;  %s2779_s5 = inlined_call_operand.hbm [shape: f32[2,8,16,32], index: 5, kind: input, shape index: {}]   ;;  %s2780_s6 = inlined_call_operand.vmem [shape: f32[2,16,32], index: 6, kind: input, shape index: {}]   ;;  %s2781_s7 = inlined_call_operand.hbm [shape: bf16[32,32], index: 7, kind: input, shape index: {}]   ;;  %s2782_s8 = inlined_call_operand.vmem [shape: f32[64,32], index: 8, kind: input, shape index: {}]   ;;  %s2783_s9 = inlined_call_operand.hbm [shape: f32[16,64], index: 9, kind: input, shape index: {}]   ;;  %s2784_s10 = inlined_call_operand.vmem [shape: bf16[64,64], index: 10, kind: input, shape index: {}]   ;;  %s2785_s11 = inlined_call_operand.hbm [shape: f32[16,32], index: 11, kind: output, shape index: {}]  }
   0x1   :  { %17 = vsyncpa [#allocation6], 0 }
   0x2   :  { %18 = vsyncpa [#allocation9], 0 }
   0x3   :  { %19 = vsyncpa [#allocation4], 0  ;;  %s45_s19 = sshll.u32 %s2779_s5, 4  ;;  %s2109_s20 = smov [#allocation5]   ;;  %s46_s19 = int_to_ptr.hbm [resolvable:$true] %s45_s19 }
   0x4   :  { %s47_s21 = sshll.u32 %s2109_s20, 4  ;;  %s24_s24 = sshll.u32 %s2774_s0, 4  ;;  %s48_s21 = int_to_ptr.vmem [resolvable:$true] %s47_s21  ;;  %s25_s24 = int_to_ptr.hbm [resolvable:$true] %s24_s24 }
   0x5   :  { %s2110_s25 = smov 128   ;;  %s2111_s26 = smov 8  }
   0x6   :  { %53 = dma.hbm_to_vmem [thread:$0]  %s46_s19, 4096, %s48_s21, [#allocation6], %s2110_s25, %s2110_s25, %s2111_s26  }
   0x7   :  { %s2112_s27 = smov [#allocation2]   ;;  %s60_s5 = sshll.u32 %s2781_s7, 4  ;;  %s61_s5 = int_to_ptr.hbm [resolvable:$true] %s60_s5 }
   0x8   :  { %s26_s28 = sshll.u32 %s2112_s27, 4  ;;  %s2113_s0 = smov [#allocation7]   ;;  %s27_s28 = int_to_ptr.vmem [resolvable:$true] %s26_s28 }
   0x9   :  { %32 = dma.hbm_to_vmem [thread:$0]  %s25_s24, 256, %s27_s28, [#allocation3], %s2110_s25, %s2110_s25, %s2111_s26  }
   0xa   :  { %s62_s12 = sshll.u32 %s2113_s0, 4  ;;  %s75_s15 = sshll.u32 %s2783_s9, 4  ;;  %s63_s12 = int_to_ptr.vmem [resolvable:$true] %s62_s12  ;;  %s76_s15 = int_to_ptr.hbm [resolvable:$true] %s75_s15 }
   0xb   :  { %s2114_s16 = smov 64   ;;  %s2115_s17 = smov 4  }
   0xc   :  { %68 = dma.hbm_to_vmem [thread:$0]  %s61_s5, 256, %s63_s12, [#allocation6], %s2114_s16, %s2114_s16, %s2115_s17  }
   0xd   :  { %s2116_s7 = smov [#allocation8]  }
   0xe   :  { %s77_s18 = sshll.u32 %s2116_s7, 4  ;;  %s78_s18 = int_to_ptr.vmem [resolvable:$true] %s77_s18 }
   0xf   :  { %83 = dma.hbm_to_vmem [thread:$0]  %s76_s15, 256, %s78_s18, [#allocation9], %s2110_s25, %s2110_s25, %s2111_s26  }
  0x10   :  { %2101 = dma.done.wait [#allocation3], 256  }
  0x11   :  { %2102 = vsyncadd [#allocation3], 4294967040 }
  0x12   :  { %2103 = dma.done.wait [#allocation6], 4352  }
  0x13   :  { %2104 = vsyncadd [#allocation6], 4294962944 }
  0x14   :  { %2105 = dma.done.wait [#allocation9], 256  }
  0x15   :  { %2106 = vsyncadd [#allocation9], 4294967040  ;;  %vm150_vm0 = vcmask 261120   ;;  %v2204_v0 = vld [vmem:[#allocation2] sm:$0xff]  ;;  %v2208_v2 = vld [vmem:[#allocation2 + $0x8] sm:$0xff]  ;;  %v2117_v4 = vmov 32.0  }
  0x16   :  { %v151_v1 = vsel %vm150_vm0, %v2204_v0, 0.0  ;;  %v154_v3 = vsel %vm150_vm0, %v2208_v2, 0.0  ;;  %1911 = vrcp.f32 %v2117_v4  ;;  %v1645_v21 = vld [vmem:[%s2775_s1 + $0x10] sm:$0xf]  ;;  %v1866_v22 = vld [vmem:[%s2775_s1 + $0x14] sm:$0xf0] }
  0x17   :  { %152 = vadd.xlane.f32.xlu0 %v151_v1  ;;  %v1865_v23 = vld [vmem:[%s2775_s1 + $0x14] sm:$0xf]  ;;  %v1646_v24 = vor.u32 %v1866_v22, %v1645_v21  ;;  %v1647_v25 = vld [vmem:[%s2775_s1 + $0x18] sm:$0xf0]  ;;  %v1637_v27 = vld [vmem:[%s2775_s1] sm:$0xf] }
  0x18   :  { %v1650_v26 = vor.u32 %v1865_v23, %v1647_v25  ;;  %v1864_v28 = vld [vmem:[%s2775_s1 + $0x4] sm:$0xf0]  ;;  %v1863_v29 = vld [vmem:[%s2775_s1 + $0x4] sm:$0xf]  ;;  %v1639_v32 = vld [vmem:[%s2775_s1 + $0x8] sm:$0xf0] }
  0x19   :  { %240 = vmatpush.bf16.msra.mxu0 %v1646_v24  ;;  %v1638_v31 = vor.u32 %v1864_v28, %v1637_v27  ;;  %v1642_v34 = vor.u32 %v1863_v29, %v1639_v32  ;;  %v127_v53 = vld [vmem:[#allocation5] sm:$0xff]  ;;  %v128_v55 = vld [vmem:[#allocation5 + $0x8] sm:$0xff]  ;;  %v130_v58 = vld [vmem:[#allocation5 + $0x10] sm:$0xff]  ;;  %s2118_s15 = smov 32   ;;  %s2119_s17 = smov 96  }
  0x1a   :  { %254 = vmatpush.bf16.msra.mxu1 %v1650_v26  ;;  %v131_v59 = vld [vmem:[#allocation5 + $0x18] sm:$0xff]  ;;  %v148_v24 = vld [vmem:[#allocation5 + $0x70] sm:$0xff]  ;;  %v145_v25 = vld [vmem:[#allocation5 + $0x60] sm:$0xff]  ;;  %s2120_s24 = smov [#allocation10]   ;;  %s1620_s29 = sshll.u32 %s2785_s11, 4  ;;  %s1621_s29 = int_to_ptr.hbm [resolvable:$true] %s1620_s29 }
  0x1b   :  { %v2294_v26 = vld [vmem:[%s2782_s8 + $0x38] sm:$0xff]  ;;  %v149_v27 = vld [vmem:[#allocation5 + $0x78] sm:$0xff]  ;;  %v2302_v28 = vld [vmem:[%s2782_s8 + $0x10] sm:$0xff]  ;;  %s1618_s27 = sshll.u32 %s2120_s24, 4  ;;  %s1619_s27 = int_to_ptr.vmem [resolvable:$true] %s1618_s27 }
  0x1c   :  { %v1912_v5 = vpop.eup %1911  ;;  %v2307_v29 = vld [vmem:[%s2782_s8 + $0x20] sm:$0xff]  ;;  %v146_v32 = vld [vmem:[#allocation5 + $0x68] sm:$0xff] }
  0x1d   :  { %v158_v6 = vmul.f32 32.0, %v1912_v5  ;;  %vm162_vm1 = vweird.f32 %v1912_v5  ;;  %241 = vmatpush.bf16.msra.mxu0 %v1638_v31  ;;  %v2321_v31 = vld [vmem:[%s2782_s8 + $0x18] sm:$0xff] }
  0x1e   :  { %255 = vmatpush.bf16.msra.mxu1 %v1642_v34 }
  0x1f   :  { %155 = vadd.xlane.f32.xlu0 %v154_v3  ;;  %v159_v7 = vsub.f32 1.0, %v158_v6  ;;  %v2258_v6 = vld [vmem:[#allocation7 + $0x8] sm:$0xff] }
  0x20   :  { %296 = vmatpush.bf16.msra.mxu2 %v2258_v6  ;;  %355 = vmatpush.bf16.msra.mxu3 %v2258_v6 }
  0x21   :  { %v160_v8 = vmul.f32 %v1912_v5, %v159_v7  ;;  %v2262_v7 = vld [vmem:[#allocation7] sm:$0xff] }
  0x23   :  { %v161_v9 = vadd.f32 %v1912_v5, %v160_v8 }
  0x24   :  { %297 = vmatpush.bf16.msra.mxu2 %v2262_v7  ;;  %356 = vmatpush.bf16.msra.mxu3 %v2262_v7 }
  0x25   :  { %v2212_v10 = vsel %vm162_vm1, %v1912_v5, %v161_v9 }
  0x8a   :  { %v153_v11 = vpop.xlane.xlu0 %152 }
  0x8b   :  { %v164_v12 = vmul.f32 %v2212_v10, %v153_v11 }
  0x8d   :  { %v166_v13 = vsub.f32 %v2204_v0, %v164_v12 }
  0x8f   :  { %v168_v14 = vmul.f32 %v166_v13, %v166_v13 }
  0x91   :  { %v170_v15 = vsel %vm150_vm0, %v168_v14, 0.0 }
  0x92   :  { %171 = vadd.xlane.f32.xlu1 %v170_v15  ;;  %v156_v16 = vpop.xlane.xlu0 %155 }
  0x93   :  { %v165_v17 = vmul.f32 %v2212_v10, %v156_v16 }
  0x95   :  { %v167_v18 = vsub.f32 %v2208_v2, %v165_v17 }
  0x97   :  { %v169_v19 = vmul.f32 %v167_v18, %v167_v18 }
  0x99   :  { %v173_v20 = vsel %vm150_vm0, %v169_v19, 0.0 }
  0x9a   :  { %174 = vadd.xlane.f32.xlu1 %v173_v20 }
 0x105   :  { %v172_v30 = vpop.xlane.xlu1 %171 }
 0x106   :  { %v176_v33 = vmul.f32 %v172_v30, %v2212_v10  ;;  %v2316_v30 = vld [vmem:[%s2782_s8 + $0x8] sm:$0xff] }
 0x108   :  { %v178_v35 = vadd.f32 1e-05, %v176_v33 }
 0x10a   :  { %1913 = vrsqrt.f32 %v178_v35  ;;  %vm186_vm3 = vweird.f32 %v178_v35 }
 0x10d   :  { %v175_v36 = vpop.xlane.xlu1 %174 }
 0x10e   :  { %v177_v37 = vmul.f32 %v175_v36, %v2212_v10 }
 0x110   :  { %v1914_v38 = vpop.eup %1913  ;;  %v179_v39 = vadd.f32 1e-05, %v177_v37 }
 0x111   :  { %v181_v40 = vmul.f32 %v1914_v38, %v178_v35  ;;  %vm187_vm2 = vweird.f32 %v1914_v38 }
 0x112   :  { %1915 = vrsqrt.f32 %v179_v39  ;;  %vm188_vm4 = vmor %vm186_vm3, %vm187_vm2  ;;  %vm196_vm6 = vweird.f32 %v179_v39 }
 0x113   :  { %v182_v41 = vmul.f32 %v1914_v38, %v181_v40 }
 0x115   :  { %v183_v42 = vmul.f32 0.5, %v182_v41 }
 0x117   :  { %v184_v43 = vsub.f32 1.5, %v183_v42 }
 0x118   :  { %v1916_v44 = vpop.eup %1915 }
 0x119   :  { %v185_v45 = vmul.f32 %v1914_v38, %v184_v43  ;;  %v191_v46 = vmul.f32 %v1916_v44, %v179_v39  ;;  %vm197_vm5 = vweird.f32 %v1916_v44 }
 0x11a   :  { %vm198_vm7 = vmor %vm196_vm6, %vm197_vm5  ;;  %vm535_vm5 = vcmask 523264  }
 0x11b   :  { %v192_v47 = vmul.f32 %v1916_v44, %v191_v46  ;;  %v189_v48 = vsel %vm188_vm4, %v1914_v38, %v185_v45 }
 0x11c   :  { %v200_v51 = vmul.f32 %v189_v48, %v166_v13 }
 0x11d   :  { %v193_v49 = vmul.f32 0.5, %v192_v47 }
 0x11e   :  { %v202_v57 = vmul.f32 %v200_v51, %v127_v53  ;;  %v115_v51 = vld [vmem:[%s2782_s8 + $0x30] sm:$0xff]  ;;  %v2341_v53 = vld [vmem:[%s2782_s8] sm:$0xff] }
 0x11f   :  { %v194_v50 = vsub.f32 1.5, %v193_v49 }
 0x120   :  { %v204_v61 = vadd.f32 %v202_v57, %v130_v58 }
 0x121   :  { %v195_v52 = vmul.f32 %v1916_v44, %v194_v50 }
 0x123   :  { %v199_v54 = vsel %vm198_vm7, %v1916_v44, %v195_v52  ;;  %v114_v52 = vld [vmem:[%s2782_s8 + $0x28] sm:$0xff] }
 0x124   :  { %v201_v56 = vmul.f32 %v199_v54, %v167_v18 }
 0x126   :  { %v203_v60 = vmul.f32 %v201_v56, %v128_v55 }
 0x128   :  { %v205_v62 = vadd.f32 %v203_v60, %v131_v59 }
 0x12a   :  { %v206_v63 = vpack.c.bf16 %v205_v62, %v204_v61 }
 0x12c   :  { %1651 = vmatmul.msk.bf16.vlgmr.msra.gmra.mxu0 %vm150_vm0, %v206_v63  ;;  %1652 = vmatmul.msk.bf16.vlgmr.msra.gmra.mxu1 %vm150_vm0, %v206_v63 }
 0x1a9   :  { %v2248_v1 = vpop.f32.mrf.mxu0  ;;  %v257_v3 = vpop.f32.mrf.mxu1 }
 0x1aa   :  { %332 = vrot.lane.b32.xlu2 %v257_v3, %s2118_s15  ;;  %264 = vrot.lane.b32.xlu1 %v2248_v1, %s2118_s15 }
 0x1b1   :  { %v259_v4 = vpop.f32.mrf.mxu1  ;;  %v2254_v5 = vpop.f32.mrf.mxu0 }
 0x1b2   :  { %334 = vrot.lane.b32.xlu2 %v259_v4, %s2118_s15  ;;  %405 = vrot.lane.b32.xlu1 %v148_v24, %s2118_s15 }
 0x1ba   :  { %266 = vrot.lane.b32.xlu2 %v2254_v5, %s2118_s15  ;;  %435 = vrot.lane.b32.xlu1 %v2294_v26, %s2118_s15 }
 0x1c2   :  { %425 = vrot.lane.b32.xlu1 %v2302_v28, %s2118_s15  ;;  %397 = vrot.lane.b32.xlu2 %v146_v32, %s2118_s15 }
 0x1ca   :  { %423 = vrot.lane.b32.xlu1 %v2316_v30, %s2118_s15 }
 0x204   :  { %v333_v8 = vpop.permute.xlu2 %332 }
 0x205   :  { %v2267_v9 = vsub.f32 %v2248_v1, %v333_v8 }
 0x207   :  { %v340_v13 = vmul.f32 %v2267_v9, %v2267_v9 }
 0x20c   :  { %v335_v11 = vpop.permute.xlu2 %334 }
 0x20d   :  { %v2270_v12 = vsub.f32 %v2254_v5, %v335_v11 }
 0x20f   :  { %v341_v14 = vmul.f32 %v2270_v12, %v2270_v12 }
 0x211   :  { %v342_v15 = vpack.c.bf16 %v341_v14, %v340_v13 }
 0x213   :  { %344 = vrot.lane.b32.xlu0 %v342_v15, %s2119_s17 }
 0x214   :  { %v267_v16 = vpop.permute.xlu2 %266 }
 0x215   :  { %v2278_v17 = vsub.f32 %v2254_v5, %v267_v16 }
 0x217   :  { %v273_v20 = vmul.f32 %v2278_v17, %v2278_v17 }
 0x21b   :  { %395 = vrot.lane.b32.xlu0 %v145_v25, %s2118_s15 }
 0x21c   :  { %v265_v18 = vpop.permute.xlu1 %264  ;;  %v398_v55 = vpop.permute.xlu2 %397 }
 0x21d   :  { %v2281_v19 = vsub.f32 %v2248_v1, %v265_v18 }
 0x21f   :  { %v272_v21 = vmul.f32 %v2281_v19, %v2281_v19 }
 0x221   :  { %v274_v22 = vpack.c.bf16 %v273_v20, %v272_v21 }
 0x223   :  { %1661 = vmatmul.msk.bf16.vlgmr.msra.gmra.mxu2 %vm150_vm0, %v274_v22  ;;  %407 = vrot.lane.b32.xlu0 %v149_v27, %s2118_s15 }
 0x224   :  { %v406_v56 = vpop.permute.xlu1 %405 }
 0x22b   :  { %429 = vrot.lane.b32.xlu0 %v2307_v29, %s2118_s15 }
 0x22c   :  { %v2345_v59 = vpop.permute.xlu1 %435 }
 0x233   :  { %427 = vrot.lane.b32.xlu0 %v2321_v31, %s2118_s15 }
 0x234   :  { %v2351_v11 = vpop.permute.xlu1 %425 }
 0x23c   :  { %v2368_v27 = vpop.permute.xlu1 %423 }
 0x285   :  { %v345_v23 = vpop.permute.xlu0 %344 }
 0x286   :  { %1662 = vmatmul.msk.bf16.vlgmr.msra.gmra.mxu3 %vm150_vm0, %v345_v23 }
 0x28d   :  { %v396_v54 = vpop.permute.xlu0 %395 }
 0x295   :  { %v408_v57 = vpop.permute.xlu0 %407 }
 0x29d   :  { %v2347_v60 = vpop.permute.xlu0 %429 }
 0x2a5   :  { %v2353_v13 = vpop.permute.xlu0 %427 }
 0x309   :  { %v358_v33 = vpop.f32.mrf.mxu3 }
 0x30a   :  { %v359_v34 = vadd.f32 1e-05, %v358_v33 }
 0x30c   :  { %1917 = vrsqrt.f32 %v359_v34  ;;  %vm369_vm9 = vweird.f32 %v359_v34 }
 0x311   :  { %v360_v35 = vpop.f32.mrf.mxu3 }
 0x312   :  { %v1918_v36 = vpop.eup %1917  ;;  %v361_v37 = vadd.f32 1e-05, %v360_v35 }
 0x313   :  { %v364_v38 = vmul.f32 %v1918_v36, %v359_v34  ;;  %vm370_vm8 = vweird.f32 %v1918_v36 }
 0x314   :  { %1919 = vrsqrt.f32 %v361_v37  ;;  %vm371_vm10 = vmor %vm369_vm9, %vm370_vm8  ;;  %vm379_vm12 = vweird.f32 %v361_v37 }
 0x315   :  { %v365_v39 = vmul.f32 %v1918_v36, %v364_v38 }
 0x317   :  { %v366_v40 = vmul.f32 0.5, %v365_v39 }
 0x319   :  { %v367_v41 = vsub.f32 1.5, %v366_v40 }
 0x31a   :  { %v1920_v42 = vpop.eup %1919 }
 0x31b   :  { %v374_v43 = vmul.f32 %v1920_v42, %v361_v37  ;;  %v368_v44 = vmul.f32 %v1918_v36, %v367_v41  ;;  %vm380_vm11 = vweird.f32 %v1920_v42 }
 0x31c   :  { %vm381_vm13 = vmor %vm379_vm12, %vm380_vm11 }
 0x31d   :  { %v375_v45 = vmul.f32 %v1920_v42, %v374_v43  ;;  %v372_v46 = vsel %vm371_vm10, %v1918_v36, %v368_v44  ;;  %v299_v36 = vpop.f32.mrf.mxu2 }
 0x31e   :  { %385 = vrot.lane.b32.xlu2 %v372_v46, %s2118_s15  ;;  %v300_v39 = vadd.f32 1e-05, %v299_v36 }
 0x31f   :  { %v376_v47 = vmul.f32 0.5, %v375_v45 }
 0x320   :  { %vm310_vm3 = vweird.f32 %v300_v39 }
 0x321   :  { %v377_v48 = vsub.f32 1.5, %v376_v47 }
 0x323   :  { %v378_v49 = vmul.f32 %v1920_v42, %v377_v48 }
 0x325   :  { %v382_v50 = vsel %vm381_vm13, %v1920_v42, %v378_v49  ;;  %v301_v37 = vpop.f32.mrf.mxu2 }
 0x326   :  { %387 = vrot.lane.b32.xlu2 %v382_v50, %s2118_s15  ;;  %v302_v38 = vadd.f32 1e-05, %v301_v37 }
 0x328   :  { %1921 = vrsqrt.f32 %v302_v38  ;;  %vm320_vm1 = vweird.f32 %v302_v38 }
 0x329   :  { %1923 = vrsqrt.f32 %v300_v39 }
 0x32e   :  { %433 = vrot.lane.b32.xlu2 %v115_v51, %s2118_s15  ;;  %v1922_v40 = vpop.eup %1921 }
 0x32f   :  { %v1924_v41 = vpop.eup %1923  ;;  %vm321_vm14 = vweird.f32 %v1922_v40 }
 0x330   :  { %v305_v42 = vmul.f32 %v1924_v41, %v300_v39  ;;  %vm311_vm15 = vweird.f32 %v1924_v41  ;;  %vm322_vm2 = vmor %vm320_vm1, %vm321_vm14  ;;  %v2416_v39 = vld [vmem:[#allocation8] sm:$0xff] }
 0x331   :  { %vm312_vm4 = vmor %vm310_vm3, %vm311_vm15 }
 0x332   :  { %v306_v45 = vmul.f32 %v1924_v41, %v305_v42  ;;  %v2420_v42 = vld [vmem:[#allocation8 + $0x8] sm:$0xff] }
 0x334   :  { %v307_v46 = vmul.f32 0.5, %v306_v45 }
 0x336   :  { %431 = vrot.lane.b32.xlu2 %v114_v52, %s2118_s15  ;;  %v308_v49 = vsub.f32 1.5, %v307_v46  ;;  %v2437_v46 = vld [vmem:[%s2784_s10 + $0x10] sm:$0xff] }
 0x33e   :  { %421 = vrot.lane.b32.xlu2 %v2341_v53, %s2118_s15 }
 0x378   :  { %v386_v58 = vpop.permute.xlu2 %385 }
 0x379   :  { %v391_v61 = vmul.f32 %v386_v58, %v2267_v9 }
 0x37b   :  { %v401_v62 = vmul.f32 %v396_v54, %v391_v61  ;;  %v140_v61 = vld [vmem:[#allocation5 + $0x48] sm:$0xff] }
 0x37d   :  { %v411_v4 = vadd.f32 %v406_v56, %v401_v62 }
 0x37f   :  { %v447_v15 = vmul.f32 %v2351_v11, %v411_v4  ;;  %v449_v23 = vmul.f32 %v2347_v60, %v411_v4 }
 0x380   :  { %v388_v63 = vpop.permute.xlu2 %387 }
 0x381   :  { %v392_v3 = vmul.f32 %v388_v63, %v2270_v12  ;;  %v139_v63 = vld [vmem:[#allocation5 + $0x40] sm:$0xff] }
 0x383   :  { %v402_v8 = vmul.f32 %v398_v55, %v392_v3 }
 0x385   :  { %v412_v14 = vadd.f32 %v408_v57, %v402_v8  ;;  %v143_v8 = vld [vmem:[#allocation5 + $0x58] sm:$0xff] }
 0x387   :  { %v448_v16 = vmul.f32 %v2353_v13, %v412_v14  ;;  %v452_v21 = vmul.f32 %v2345_v59, %v412_v14  ;;  %v446_v33 = vmul.f32 %v2368_v27, %v412_v14 }
 0x388   :  { %v2357_v18 = vpop.permute.xlu2 %433 }
 0x389   :  { %v454_v20 = vpack.c.bf16 %v448_v16, %v447_v15  ;;  %v451_v9 = vmul.f32 %v2357_v18, %v411_v4  ;;  %v142_v16 = vld [vmem:[#allocation5 + $0x50] sm:$0xff] }
 0x38b   :  { %v456_v22 = vpack.c.bf16 %v452_v21, %v451_v9  ;;  %500 = vrot.lane.b32.xlu1 %v454_v20, %s2119_s17 }
 0x38d   :  { %504 = vrot.lane.b32.xlu0 %v456_v22, %s2119_s17 }
 0x390   :  { %v2363_v12 = vpop.permute.xlu2 %431 }
 0x391   :  { %v450_v24 = vmul.f32 %v2363_v12, %v412_v14 }
 0x393   :  { %v455_v25 = vpack.c.bf16 %v450_v24, %v449_v23 }
 0x395   :  { %502 = vrot.lane.b32.xlu2 %v455_v25, %s2119_s17 }
 0x398   :  { %v2370_v32 = vpop.permute.xlu2 %421 }
 0x399   :  { %v445_v34 = vmul.f32 %v2370_v32, %v411_v4 }
 0x39b   :  { %v453_v35 = vpack.c.bf16 %v446_v33, %v445_v34 }
 0x39d   :  { %498 = vrot.lane.b32.xlu0 %v453_v35, %s2119_s17 }
 0x3a5   :  { %469 = vrot.lane.b32.xlu0 %v115_v51, %s2114_s16  ;;  %v309_v51 = vmul.f32 %v1924_v41, %v308_v49 }
 0x3a7   :  { %v313_v57 = vsel %vm312_vm4, %v1924_v41, %v309_v51 }
 0x3a8   :  { %v324_v62 = vmul.f32 %v313_v57, %v2281_v19 }
 0x3aa   :  { %v326_v14 = vmul.f32 %v324_v62, %v139_v63 }
 0x3ac   :  { %v328_v9 = vadd.f32 %v326_v14, %v142_v16 }
 0x3ad   :  { %471 = vrot.lane.b32.xlu0 %v2294_v26, %s2114_s16  ;;  %v315_v26 = vmul.f32 %v1922_v40, %v302_v38 }
 0x3af   :  { %v316_v43 = vmul.f32 %v1922_v40, %v315_v26 }
 0x3b5   :  { %465 = vrot.lane.b32.xlu0 %v2307_v29, %s2114_s16 }
 0x3bd   :  { %467 = vrot.lane.b32.xlu0 %v114_v52, %s2114_s16 }
 0x3c5   :  { %461 = vrot.lane.b32.xlu0 %v2302_v28, %s2114_s16  ;;  %v317_v28 = vmul.f32 0.5, %v316_v43 }
 0x3cd   :  { %459 = vrot.lane.b32.xlu0 %v2316_v30, %s2114_s16  ;;  %v318_v30 = vsub.f32 1.5, %v317_v28  ;;  %v2431_v28 = vld [vmem:[%s2784_s10 + $0x18] sm:$0xff] }
 0x3ce   :  { %580 = vmatpush.bf16.msrb.mxu1 %v2431_v28 }
 0x3cf   :  { %v319_v50 = vmul.f32 %v1922_v40, %v318_v30 }
 0x3d1   :  { %v323_v54 = vsel %vm322_vm2, %v1922_v40, %v319_v50 }
 0x3d2   :  { %v325_v58 = vmul.f32 %v323_v54, %v2278_v17  ;;  %581 = vmatpush.bf16.msrb.mxu1 %v2437_v46 }
 0x3d4   :  { %v327_v3 = vmul.f32 %v325_v58, %v140_v61 }
 0x3d6   :  { %v329_v20 = vadd.f32 %v327_v3, %v143_v8 }
 0x3d8   :  { %v493_v21 = vpack.c.bf16 %v329_v20, %v328_v9 }
 0x3ef   :  { %v503_v47 = vpop.permute.xlu2 %502 }
 0x3f0   :  { %v516_v48 = vsel %vm150_vm0, %v503_v47, 0 }
 0x3fd   :  { %v501_v52 = vpop.permute.xlu1 %500 }
 0x3fe   :  { %v513_v56 = vsel %vm150_vm0, %v501_v52, 0 }
 0x3ff   :  { %v505_v29 = vpop.permute.xlu0 %504 }
 0x400   :  { %v519_v44 = vsel %vm150_vm0, %v505_v29, 0 }
 0x401   :  { %525 = vmatpush.bf16.xpose.msrb.mxu0 %v519_v44 }
 0x409   :  { %526 = vmatpush.bf16.xpose.msrb.mxu0 %v516_v48 }
 0x40f   :  { %v499_v55 = vpop.permute.xlu0 %498 }
 0x410   :  { %v510_v15 = vsel %vm150_vm0, %v499_v55, 0 }
 0x411   :  { %527 = vmatpush.bf16.xpose.msrb.mxu0 %v513_v56 }
 0x417   :  { %v2390_v4 = vpop.permute.xlu0 %469 }
 0x418   :  { %v487_v19 = vmul.f32 %v2390_v4, %v2248_v1 }
 0x419   :  { %528 = vmatpush.bf16.xpose.msrb.mxu0 %v510_v15  ;;  %v1868_v15 = vld [vmem:[%s2776_s2 + $0x8] sm:$0xff] }
 0x41a   :  { %654 = vmatpush.bf16.msrb.mxu3 %v1868_v15  ;;  %v1869_v15 = vld [vmem:[%s2777_s3 + $0x4] sm:$0xf] }
 0x41f   :  { %v2395_v17 = vpop.permute.xlu0 %471 }
 0x420   :  { %v488_v22 = vmul.f32 %v2395_v17, %v2254_v5  ;;  %1663 = vmatmul.msk.bf16.vlgmr.msrb.gmra.mxu0 %vm150_vm0, %v493_v21 }
 0x421   :  { %1101 = vmatpush.bf16.msra.mxu0 %v2258_v6 }
 0x422   :  { %v492_v23 = vpack.c.bf16 %v488_v22, %v487_v19 }
 0x424   :  { %605 = vrot.lane.b32.xlu0 %v492_v23, %s2114_s16  ;;  %v1867_v23 = vld [vmem:[%s2776_s2] sm:$0xff] }
 0x425   :  { %1102 = vmatpush.bf16.msra.mxu0 %v2262_v7  ;;  %655 = vmatpush.bf16.msrb.mxu3 %v1867_v23 }
 0x427   :  { %v2403_v24 = vpop.permute.xlu0 %465 }
 0x428   :  { %v485_v33 = vmul.f32 %v2403_v24, %v2248_v1 }
 0x42f   :  { %v2405_v25 = vpop.permute.xlu0 %467 }
 0x430   :  { %v486_v34 = vmul.f32 %v2405_v25, %v2254_v5 }
 0x432   :  { %v491_v35 = vpack.c.bf16 %v486_v34, %v485_v33 }
 0x434   :  { %603 = vrot.lane.b32.xlu0 %v491_v35, %s2114_s16 }
 0x437   :  { %v2412_v36 = vpop.permute.xlu0 %461 }
 0x438   :  { %v483_v51 = vmul.f32 %v2412_v36, %v2248_v1 }
 0x43f   :  { %v2414_v37 = vpop.permute.xlu0 %459 }
 0x440   :  { %v482_v63 = vmul.f32 %v2414_v37, %v2254_v5 }
 0x496   :  { %v606_v38 = vpop.permute.xlu0 %605 }
 0x497   :  { %618 = vmatpush.bf16.msrb.mxu2 %v606_v38 }
 0x49d   :  { %v530_v40 = vpop.f32.mrf.mxu0 }
 0x49e   :  { %v531_v41 = vadd.f32 %v530_v40, %v2416_v39 }
 0x4a0   :  { %v536_v26 = vsel %vm535_vm5, %v531_v41, -inf }
 0x4a1   :  { %537 = vmax.xlane.f32.xlu2 %v536_v26 }
 0x4a5   :  { %v532_v43 = vpop.f32.mrf.mxu0 }
 0x4a6   :  { %v533_v29 = vadd.f32 %v532_v43, %v2420_v42  ;;  %v604_v44 = vpop.permute.xlu0 %603 }
 0x4a7   :  { %619 = vmatpush.bf16.msrb.mxu2 %v604_v44 }
 0x4a8   :  { %v539_v45 = vsel %vm535_vm5, %v533_v29, -inf }
 0x4a9   :  { %540 = vmax.xlane.f32.xlu1 %v539_v45 }
 0x4b9   :  { %463 = vrot.lane.b32.xlu2 %v2321_v31, %s2114_s16  ;;  %v2443_v31 = vld [vmem:[%s2784_s10 + $0x8] sm:$0xff] }
 0x4ba   :  { %582 = vmatpush.bf16.msrb.mxu1 %v2443_v31 }
 0x4c2   :  { %457 = vrot.lane.b32.xlu1 %v2341_v53, %s2114_s16  ;;  %v2449_v53 = vld [vmem:[%s2784_s10] sm:$0xff] }
 0x4c3   :  { %583 = vmatpush.bf16.msrb.mxu1 %v2449_v53 }
 0x514   :  { %v538_v47 = vpop.xlane.xlu2 %537 }
 0x515   :  { %v542_v30 = vsub.f32 %v531_v41, %v538_v47 }
 0x517   :  { %v544_v48 = vmul.f32 1.442695, %v542_v30 }
 0x519   :  { %1925 = vpow2.f32 %v544_v48 }
 0x51c   :  { %v541_v49 = vpop.xlane.xlu1 %540  ;;  %v2452_v50 = vpop.permute.xlu2 %463 }
 0x51d   :  { %v543_v52 = vsub.f32 %v533_v29, %v541_v49  ;;  %v484_v54 = vmul.f32 %v2452_v50, %v2254_v5 }
 0x51f   :  { %v546_v55 = vmul.f32 1.442695, %v543_v52  ;;  %v490_v56 = vpack.c.bf16 %v484_v54, %v483_v51  ;;  %v1926_v57 = vpop.eup %1925  ;;  %v1701_v54 = vld [vmem:[%s2777_s3 + $0x10] sm:$0xf] }
 0x521   :  { %1927 = vpow2.f32 %v546_v55  ;;  %601 = vrot.lane.b32.xlu2 %v490_v56, %s2114_s16  ;;  %v1872_v55 = vld [vmem:[%s2777_s3 + $0x14] sm:$0xf0]  ;;  %v1871_v56 = vld [vmem:[%s2777_s3 + $0x14] sm:$0xf] }
 0x527   :  { %v1928_v58 = vpop.eup %1927 }
 0x528   :  { %v548_v61 = vpack.c.bf16 %v1928_v58, %v1926_v57 }
 0x52a   :  { %1680 = vmatmul.msk.bf16.vlgmr.msrb.gmra.mxu1 %vm535_vm5, %v548_v61 }
 0x534   :  { %v2460_v62 = vpop.permute.xlu1 %457 }
 0x535   :  { %v481_v3 = vmul.f32 %v2460_v62, %v2248_v1 }
 0x537   :  { %v489_v8 = vpack.c.bf16 %v482_v63, %v481_v3 }
 0x539   :  { %599 = vrot.lane.b32.xlu0 %v489_v8, %s2114_s16  ;;  %v1693_v8 = vld [vmem:[%s2777_s3] sm:$0xf] }
 0x57b   :  { %v602_v14 = vpop.permute.xlu2 %601 }
 0x57c   :  { %620 = vmatpush.bf16.msrb.mxu2 %v602_v14  ;;  %v1870_v14 = vld [vmem:[%s2777_s3 + $0x4] sm:$0xf0] }
 0x5a7   :  { %v585_v16 = vpop.f32.mrf.mxu1 }
 0x5a8   :  { %1929 = vrcp.f32 %v585_v16  ;;  %v1694_v16 = vor.u32 %v1870_v14, %v1693_v8  ;;  %v1874_v8 = vld [vmem:[%s2778_s4 + $0x8] sm:$0xff]  ;;  %v1873_v14 = vld [vmem:[%s2778_s4] sm:$0xff] }
 0x5ab   :  { %v600_v20 = vpop.permute.xlu0 %599 }
 0x5ac   :  { %621 = vmatpush.bf16.msrb.mxu2 %v600_v20  ;;  %v1695_v20 = vld [vmem:[%s2777_s3 + $0x8] sm:$0xf0] }
 0x5ae   :  { %v1930_v5 = vpop.eup %1929 }
 0x5af   :  { %v587_v9 = vpop.f32.mrf.mxu1  ;;  %v592_v19 = vmul.f32 %v1930_v5, %v1926_v57  ;;  %v1702_v57 = vor.u32 %v1872_v55, %v1701_v54  ;;  %v1698_v5 = vor.u32 %v1869_v15, %v1695_v20  ;;  %v136_v54 = vld [vmem:[#allocation5 + $0x30] sm:$0xff]  ;;  %v137_v55 = vld [vmem:[#allocation5 + $0x38] sm:$0xff] }
 0x5b0   :  { %1931 = vrcp.f32 %v587_v9 }
 0x5b1   :  { %746 = vmatpush.bf16.msra.mxu1 %v1702_v57 }
 0x5b5   :  { %747 = vmatpush.bf16.msra.mxu1 %v1694_v16 }
 0x5b6   :  { %v1932_v21 = vpop.eup %1931 }
 0x5b7   :  { %v593_v1 = vmul.f32 %v1932_v21, %v1928_v58  ;;  %v1703_v58 = vld [vmem:[%s2777_s3 + $0x18] sm:$0xf0] }
 0x5b8   :  { %v1706_v61 = vor.u32 %v1871_v56, %v1703_v58 }
 0x5b9   :  { %v594_v22 = vpack.c.bf16 %v593_v1, %v592_v19 }
 0x5ba   :  { %760 = vmatpush.bf16.msra.mxu2 %v1706_v61 }
 0x5bb   :  { %1681 = vmatmul.msk.bf16.vlgmr.msrb.gmra.mxu2 %vm535_vm5, %v594_v22 }
 0x5be   :  { %761 = vmatpush.bf16.msra.mxu2 %v1698_v5 }
 0x5c2   :  { %1042 = vmatpush.bf16.msrb.mxu2 %v2258_v6 }
 0x5c6   :  { %1043 = vmatpush.bf16.msrb.mxu2 %v2262_v7  ;;  %v133_v7 = vld [vmem:[#allocation5 + $0x20] sm:$0xff] }
 0x63e   :  { %v623_v33 = vpop.f32.mrf.mxu2 }
 0x646   :  { %v625_v34 = vpop.f32.mrf.mxu2 }
 0x647   :  { %v628_v35 = vpack.c.bf16 %v625_v34, %v623_v33 }
 0x649   :  { %1690 = vmatmul.msk.bf16.vlgmr.msrb.gmra.mxu3 %vm150_vm0, %v628_v35 }
 0x6cc   :  { %v657_v38 = vpop.f32.mrf.mxu3 }
 0x6cd   :  { %v2476_v40 = vadd.f32 %v657_v38, %v2204_v0 }
 0x6cf   :  { %v664_v41 = vsel %vm150_vm0, %v2476_v40, 0.0 }
 0x6d0   :  { %665 = vadd.xlane.f32.xlu1 %v664_v41 }
 0x6d4   :  { %v659_v26 = vpop.f32.mrf.mxu3 }
 0x6d5   :  { %v2481_v43 = vadd.f32 %v659_v26, %v2208_v2 }
 0x6d7   :  { %v667_v29 = vsel %vm150_vm0, %v2481_v43, 0.0 }
 0x6d8   :  { %668 = vadd.xlane.f32.xlu2 %v667_v29 }
 0x743   :  { %v666_v44 = vpop.xlane.xlu1 %665 }
 0x744   :  { %v670_v45 = vmul.f32 %v666_v44, %v2212_v10 }
 0x746   :  { %v672_v47 = vsub.f32 %v2476_v40, %v670_v45 }
 0x748   :  { %v674_v30 = vmul.f32 %v672_v47, %v672_v47 }
 0x74a   :  { %v676_v0 = vsel %vm150_vm0, %v674_v30, 0.0 }
 0x74b   :  { %677 = vadd.xlane.f32.xlu0 %v676_v0  ;;  %v669_v48 = vpop.xlane.xlu2 %668 }
 0x74c   :  { %v671_v49 = vmul.f32 %v669_v48, %v2212_v10  ;;  %v134_v48 = vld [vmem:[#allocation5 + $0x28] sm:$0xff] }
 0x74e   :  { %v673_v51 = vsub.f32 %v2481_v43, %v671_v49 }
 0x750   :  { %v675_v2 = vmul.f32 %v673_v51, %v673_v51 }
 0x752   :  { %v679_v52 = vsel %vm150_vm0, %v675_v2, 0.0 }
 0x753   :  { %680 = vadd.xlane.f32.xlu1 %v679_v52 }
 0x7be   :  { %v678_v63 = vpop.xlane.xlu0 %677 }
 0x7bf   :  { %v682_v3 = vmul.f32 %v678_v63, %v2212_v10 }
 0x7c1   :  { %v684_v9 = vadd.f32 1e-05, %v682_v3 }
 0x7c3   :  { %1933 = vrsqrt.f32 %v684_v9  ;;  %vm692_vm7 = vweird.f32 %v684_v9 }
 0x7c6   :  { %v681_v21 = vpop.xlane.xlu1 %680 }
 0x7c7   :  { %v683_v19 = vmul.f32 %v681_v21, %v2212_v10 }
 0x7c9   :  { %v1934_v1 = vpop.eup %1933  ;;  %v685_v22 = vadd.f32 1e-05, %v683_v19 }
 0x7ca   :  { %v687_v23 = vmul.f32 %v1934_v1, %v684_v9  ;;  %vm693_vm6 = vweird.f32 %v1934_v1 }
 0x7cb   :  { %1935 = vrsqrt.f32 %v685_v22  ;;  %vm694_vm8 = vmor %vm692_vm7, %vm693_vm6  ;;  %vm702_vm10 = vweird.f32 %v685_v22 }
 0x7cc   :  { %v688_v33 = vmul.f32 %v1934_v1, %v687_v23 }
 0x7ce   :  { %v689_v34 = vmul.f32 0.5, %v688_v33 }
 0x7d0   :  { %v690_v35 = vsub.f32 1.5, %v689_v34 }
 0x7d1   :  { %v1936_v38 = vpop.eup %1935 }
 0x7d2   :  { %v691_v41 = vmul.f32 %v1934_v1, %v690_v35  ;;  %v697_v26 = vmul.f32 %v1936_v38, %v685_v22  ;;  %vm703_vm9 = vweird.f32 %v1936_v38 }
 0x7d3   :  { %vm704_vm11 = vmor %vm702_vm10, %vm703_vm9 }
 0x7d4   :  { %v698_v29 = vmul.f32 %v1936_v38, %v697_v26  ;;  %v695_v6 = vsel %vm694_vm8, %v1934_v1, %v691_v41 }
 0x7d5   :  { %v706_v30 = vmul.f32 %v695_v6, %v672_v47  ;;  %v1880_v47 = vld [vmem:[%s2778_s4 + $0x38] sm:$0xff] }
 0x7d6   :  { %v699_v44 = vmul.f32 0.5, %v698_v29  ;;  %875 = vmatpush.bf16.msra.mxu3 %v1880_v47 }
 0x7d7   :  { %v708_v2 = vmul.f32 %v706_v30, %v133_v7 }
 0x7d8   :  { %v700_v45 = vsub.f32 1.5, %v699_v44 }
 0x7d9   :  { %v710_v57 = vadd.f32 %v708_v2, %v136_v54 }
 0x7da   :  { %v701_v0 = vmul.f32 %v1936_v38, %v700_v45 }
 0x7dc   :  { %v705_v49 = vsel %vm704_vm11, %v1936_v38, %v701_v0 }
 0x7dd   :  { %v707_v52 = vmul.f32 %v705_v49, %v673_v51  ;;  %v1879_v51 = vld [vmem:[%s2778_s4 + $0x30] sm:$0xff] }
 0x7de   :  { %876 = vmatpush.bf16.msra.mxu3 %v1879_v51 }
 0x7df   :  { %v709_v56 = vmul.f32 %v707_v52, %v134_v48 }
 0x7e1   :  { %v711_v58 = vadd.f32 %v709_v56, %v137_v55 }
 0x7e3   :  { %v712_v61 = vpack.c.bf16 %v711_v58, %v710_v57 }
 0x7e5   :  { %1707 = vmatmul.msk.bf16.vlgmr.msra.gmra.mxu1 %vm150_vm0, %v712_v61  ;;  %1708 = vmatmul.msk.bf16.vlgmr.msra.gmra.mxu2 %vm150_vm0, %v712_v61 }
 0x7e6   :  { %1245 = vmatpush.bf16.msra.mxu2 %v2431_v28  ;;  %v1878_v28 = vld [vmem:[%s2778_s4 + $0x28] sm:$0xff] }
 0x7e7   :  { %877 = vmatpush.bf16.msra.mxu3 %v1878_v28 }
 0x7ea   :  { %1246 = vmatpush.bf16.msra.mxu2 %v2437_v46  ;;  %v1877_v46 = vld [vmem:[%s2778_s4 + $0x20] sm:$0xff] }
 0x7eb   :  { %878 = vmatpush.bf16.msra.mxu3 %v1877_v46 }
 0x7ee   :  { %1247 = vmatpush.bf16.msra.mxu2 %v2443_v31  ;;  %v1876_v31 = vld [vmem:[%s2778_s4 + $0x18] sm:$0xff] }
 0x7ef   :  { %879 = vmatpush.bf16.msra.mxu3 %v1876_v31 }
 0x7f2   :  { %1248 = vmatpush.bf16.msra.mxu2 %v2449_v53  ;;  %v1875_v53 = vld [vmem:[%s2778_s4 + $0x10] sm:$0xff] }
 0x7f3   :  { %880 = vmatpush.bf16.msra.mxu3 %v1875_v53 }
 0x7f7   :  { %881 = vmatpush.bf16.msra.mxu3 %v1874_v8 }
 0x7fb   :  { %882 = vmatpush.bf16.msra.mxu3 %v1873_v14 }
 0x862   :  { %v749_v63 = vpop.f32.mrf.mxu1 }
 0x863   :  { %v1709_v3 = vmul.f32 -1.442695, %v749_v63 }
 0x865   :  { %1937 = vpow2.f32 %v1709_v3 }
 0x868   :  { %v763_v26 = vpop.f32.mrf.mxu2 }
 0x86a   :  { %v751_v15 = vpop.f32.mrf.mxu1 }
 0x86b   :  { %v1938_v16 = vpop.eup %1937  ;;  %v1710_v20 = vmul.f32 -1.442695, %v751_v15 }
 0x86c   :  { %v774_v9 = vadd.f32 1.0, %v1938_v16 }
 0x86d   :  { %1939 = vpow2.f32 %v1710_v20 }
 0x86e   :  { %1941 = vrcp.f32 %v774_v9  ;;  %v787_v35 = vand.u32 2147483648, %v774_v9  ;;  %vm781_vm13 = vweird.f32 %v774_v9  ;;  %v785_v38 = vand.u32 2147483647, %v774_v9 }
 0x870   :  { %v788_v44 = vor.u32 1.1754944e-38, %v787_v35  ;;  %vm786_vm15 = vcmp.eq.f32.partialorder %v785_v38, 8.507059e+37  ;;  %v765_v56 = vpop.f32.mrf.mxu2  ;;  %v1883_v38 = vld [vmem:[%s2775_s1 + $0x34] sm:$0xf] }
 0x873   :  { %v1940_v5 = vpop.eup %1939 }
 0x874   :  { %v1942_v21 = vpop.eup %1941  ;;  %v775_v19 = vadd.f32 1.0, %v1940_v5  ;;  %v1757_v5 = vld [vmem:[%s2775_s1 + $0x30] sm:$0xf] }
 0x875   :  { %v777_v1 = vmul.f32 %v1942_v21, %v774_v9  ;;  %vm782_vm12 = vweird.f32 %v1942_v21 }
 0x876   :  { %1943 = vrcp.f32 %v775_v19  ;;  %vm783_vm14 = vmor %vm781_vm13, %vm782_vm12  ;;  %v802_v45 = vand.u32 2147483648, %v775_v19  ;;  %v800_v7 = vand.u32 2147483647, %v775_v19  ;;  %vm796_vm2 = vweird.f32 %v775_v19 }
 0x877   :  { %v778_v22 = vsub.f32 1.0, %v777_v1 }
 0x878   :  { %v803_v49 = vor.u32 1.1754944e-38, %v802_v45  ;;  %vm801_vm4 = vcmp.eq.f32.partialorder %v800_v7, 8.507059e+37 }
 0x879   :  { %v779_v23 = vmul.f32 %v1942_v21, %v778_v22 }
 0x87b   :  { %v780_v33 = vadd.f32 %v1942_v21, %v779_v23  ;;  %v1749_v23 = vld [vmem:[%s2775_s1 + $0x20] sm:$0xf] }
 0x87c   :  { %v1944_v34 = vpop.eup %1943 }
 0x87d   :  { %v792_v41 = vmul.f32 %v1944_v34, %v775_v19  ;;  %v784_v29 = vsel %vm783_vm14, %v1942_v21, %v780_v33  ;;  %vm797_vm1 = vweird.f32 %v1944_v34  ;;  %v1884_v21 = vld [vmem:[%s2775_s1 + $0x34] sm:$0xf0]  ;;  %v1882_v33 = vld [vmem:[%s2775_s1 + $0x24] sm:$0xf0] }
 0x87e   :  { %v789_v0 = vsel %vm786_vm15, %v788_v44, %v784_v29  ;;  %vm798_vm3 = vmor %vm796_vm2, %vm797_vm1  ;;  %v1758_v19 = vor.u32 %v1884_v21, %v1757_v5  ;;  %v1751_v44 = vld [vmem:[%s2775_s1 + $0x28] sm:$0xf0] }
 0x87f   :  { %v793_v6 = vsub.f32 1.0, %v792_v41  ;;  %v806_v2 = vmul.f32 %v789_v0, %v749_v63  ;;  %v1759_v41 = vld [vmem:[%s2775_s1 + $0x38] sm:$0xf0] }
 0x880   :  { %998 = vmatpush.bf16.msrb.mxu1 %v1758_v19 }
 0x881   :  { %v794_v30 = vmul.f32 %v1944_v34, %v793_v6  ;;  %v808_v57 = vmul.f32 %v806_v2, %v763_v26  ;;  %v1881_v26 = vld [vmem:[%s2775_s1 + $0x24] sm:$0xf]  ;;  %v1762_v6 = vor.u32 %v1883_v38, %v1759_v41 }
 0x883   :  { %v795_v48 = vadd.f32 %v1944_v34, %v794_v30  ;;  %v1754_v30 = vor.u32 %v1881_v26, %v1751_v44 }
 0x885   :  { %v799_v52 = vsel %vm798_vm3, %v1944_v34, %v795_v48  ;;  %v1750_v34 = vor.u32 %v1882_v33, %v1749_v23 }
 0x886   :  { %v804_v54 = vsel %vm801_vm4, %v803_v49, %v799_v52 }
 0x887   :  { %v807_v55 = vmul.f32 %v804_v54, %v751_v15  ;;  %999 = vmatpush.bf16.msrb.mxu1 %v1750_v34 }
 0x889   :  { %v809_v58 = vmul.f32 %v807_v55, %v765_v56 }
 0x88b   :  { %v810_v61 = vpack.c.bf16 %v809_v58, %v808_v57  ;;  %1012 = vmatpush.bf16.msra.mxu1 %v1762_v6 }
 0x88d   :  { %883 = vmatmul.bf16.vlgmr.msra.gmra.mxu3 %v810_v61 }
 0x88f   :  { %1013 = vmatpush.bf16.msra.mxu1 %v1754_v30 }
 0x910   :  { %v884_v47 = vpop.f32.mrf.mxu3 }
 0x911   :  { %v2550_v51 = vadd.f32 %v884_v47, %v2476_v40 }
 0x913   :  { %v915_v28 = vsel %vm150_vm0, %v2550_v51, 0.0 }
 0x914   :  { %916 = vadd.xlane.f32.xlu2 %v915_v28 }
 0x918   :  { %v886_v46 = vpop.f32.mrf.mxu3 }
 0x919   :  { %v2555_v31 = vadd.f32 %v886_v46, %v2481_v43  ;;  %v892_v46 = vld [vmem:[#allocation5 + $0x80] sm:$0xff] }
 0x91b   :  { %v918_v53 = vsel %vm150_vm0, %v2555_v31, 0.0 }
 0x91c   :  { %919 = vadd.xlane.f32.xlu0 %v918_v53 }
 0x987   :  { %v917_v63 = vpop.xlane.xlu2 %916 }
 0x988   :  { %v921_v3 = vmul.f32 %v917_v63, %v2212_v10  ;;  %v893_v63 = vld [vmem:[#allocation5 + $0x88] sm:$0xff] }
 0x98a   :  { %v923_v8 = vsub.f32 %v2550_v51, %v921_v3 }
 0x98c   :  { %v925_v14 = vmul.f32 %v923_v8, %v923_v8 }
 0x98e   :  { %v927_v40 = vsel %vm150_vm0, %v925_v14, 0.0 }
 0x98f   :  { %928 = vadd.xlane.f32.xlu1 %v927_v40  ;;  %v920_v15 = vpop.xlane.xlu0 %919 }
 0x990   :  { %v922_v16 = vmul.f32 %v920_v15, %v2212_v10  ;;  %v895_v15 = vld [vmem:[#allocation5 + $0x90] sm:$0xff] }
 0x992   :  { %v924_v20 = vsub.f32 %v2555_v31, %v922_v16  ;;  %v896_v16 = vld [vmem:[#allocation5 + $0x98] sm:$0xff] }
 0x994   :  { %v926_v43 = vmul.f32 %v924_v20, %v924_v20 }
 0x996   :  { %v930_v9 = vsel %vm150_vm0, %v926_v43, 0.0 }
 0x997   :  { %931 = vadd.xlane.f32.xlu2 %v930_v9 }
 0xa02   :  { %v929_v1 = vpop.xlane.xlu1 %928 }
 0xa03   :  { %v933_v22 = vmul.f32 %v929_v1, %v2212_v10 }
 0xa05   :  { %v935_v35 = vadd.f32 1e-05, %v933_v22 }
 0xa07   :  { %1945 = vrsqrt.f32 %v935_v35  ;;  %vm943_vm7 = vweird.f32 %v935_v35 }
 0xa0a   :  { %v932_v29 = vpop.xlane.xlu2 %931 }
 0xa0b   :  { %v934_v45 = vmul.f32 %v932_v29, %v2212_v10 }
 0xa0d   :  { %v1946_v7 = vpop.eup %1945  ;;  %v936_v0 = vadd.f32 1e-05, %v934_v45 }
 0xa0e   :  { %v938_v48 = vmul.f32 %v1946_v7, %v935_v35  ;;  %vm944_vm6 = vweird.f32 %v1946_v7 }
 0xa0f   :  { %1947 = vrsqrt.f32 %v936_v0  ;;  %vm945_vm8 = vmor %vm943_vm7, %vm944_vm6  ;;  %vm953_vm10 = vweird.f32 %v936_v0 }
 0xa10   :  { %v939_v49 = vmul.f32 %v1946_v7, %v938_v48  ;;  %v910_v48 = vld [vmem:[#allocation5 + $0xe0] sm:$0xff] }
 0xa12   :  { %v940_v2 = vmul.f32 0.5, %v939_v49  ;;  %v914_v49 = vld [vmem:[#allocation5 + $0xf8] sm:$0xff] }
 0xa14   :  { %v941_v52 = vsub.f32 1.5, %v940_v2 }
 0xa15   :  { %v1948_v54 = vpop.eup %1947 }
 0xa16   :  { %v942_v55 = vmul.f32 %v1946_v7, %v941_v52  ;;  %v948_v56 = vmul.f32 %v1948_v54, %v936_v0  ;;  %vm954_vm9 = vweird.f32 %v1948_v54 }
 0xa17   :  { %vm955_vm11 = vmor %vm953_vm10, %vm954_vm9 }
 0xa18   :  { %v949_v57 = vmul.f32 %v1948_v54, %v948_v56  ;;  %v946_v58 = vsel %vm945_vm8, %v1946_v7, %v942_v55 }
 0xa19   :  { %v957_v28 = vmul.f32 %v946_v58, %v923_v8 }
 0xa1a   :  { %v950_v61 = vmul.f32 0.5, %v949_v57 }
 0xa1b   :  { %v959_v14 = vmul.f32 %v957_v28, %v892_v46 }
 0xa1c   :  { %v951_v47 = vsub.f32 1.5, %v950_v61 }
 0xa1d   :  { %v961_v9 = vadd.f32 %v959_v14, %v895_v15 }
 0xa1e   :  { %v952_v53 = vmul.f32 %v1948_v54, %v951_v47 }
 0xa20   :  { %v956_v3 = vsel %vm955_vm11, %v1948_v54, %v952_v53 }
 0xa21   :  { %v958_v40 = vmul.f32 %v956_v3, %v924_v20 }
 0xa23   :  { %v960_v43 = vmul.f32 %v958_v40, %v893_v63 }
 0xa25   :  { %v962_v5 = vadd.f32 %v960_v43, %v896_v16  ;;  %v911_v16 = vld [vmem:[#allocation5 + $0xe8] sm:$0xff] }
 0xa27   :  { %v963_v21 = vpack.c.bf16 %v962_v5, %v961_v9  ;;  %v913_v9 = vld [vmem:[#allocation5 + $0xf0] sm:$0xff] }
 0xa29   :  { %1763 = vmatmul.msk.bf16.vlgmr.msrb.gmra.mxu1 %vm150_vm0, %v963_v21 }
 0xa39   :  { %1764 = vmatmul.msk.bf16.vlgmr.msra.gmra.mxu1 %vm150_vm0, %v963_v21 }
 0xaa6   :  { %v2593_v19 = vpop.f32.mrf.mxu1 }
 0xaae   :  { %v2595_v8 = vpop.f32.mrf.mxu1 }
 0xab6   :  { %v1015_v1 = vpop.f32.mrf.mxu1 }
 0xab7   :  { %1078 = vrot.lane.b32.xlu0 %v1015_v1, %s2118_s15 }
 0xabe   :  { %v1017_v22 = vpop.f32.mrf.mxu1 }
 0xabf   :  { %1022 = vrot.lane.b32.xlu0 %v2593_v19, %s2118_s15  ;;  %1080 = vrot.lane.b32.xlu1 %v1017_v22, %s2118_s15 }
 0xac7   :  { %1024 = vrot.lane.b32.xlu1 %v2595_v8, %s2118_s15 }
 0xacf   :  { %1141 = vrot.lane.b32.xlu1 %v910_v48, %s2118_s15 }
 0xad7   :  { %1153 = vrot.lane.b32.xlu1 %v914_v49, %s2118_s15 }
 0xb29   :  { %v1079_v20 = vpop.permute.xlu0 %1078 }
 0xb2a   :  { %v1084_v23 = vsub.f32 %v2593_v19, %v1079_v20 }
 0xb2c   :  { %v1086_v35 = vmul.f32 %v1084_v23, %v1084_v23 }
 0xb31   :  { %v1081_v33 = vpop.permute.xlu1 %1080  ;;  %v1023_v41 = vpop.permute.xlu0 %1022 }
 0xb32   :  { %v1085_v34 = vsub.f32 %v2595_v8, %v1081_v33  ;;  %v2606_v29 = vsub.f32 %v2593_v19, %v1023_v41 }
 0xb34   :  { %v1087_v38 = vmul.f32 %v1085_v34, %v1085_v34  ;;  %v1030_v45 = vmul.f32 %v2606_v29, %v2606_v29 }
 0xb36   :  { %v1088_v26 = vpack.c.bf16 %v1087_v38, %v1086_v35 }
 0xb38   :  { %1090 = vrot.lane.b32.xlu2 %v1088_v26, %s2119_s17 }
 0xb39   :  { %v1025_v6 = vpop.permute.xlu1 %1024 }
 0xb3a   :  { %v2610_v44 = vsub.f32 %v2595_v8, %v1025_v6 }
 0xb3c   :  { %v1031_v30 = vmul.f32 %v2610_v44, %v2610_v44 }
 0xb3e   :  { %v1032_v7 = vpack.c.bf16 %v1031_v30, %v1030_v45 }
 0xb40   :  { %1765 = vmatmul.msk.bf16.vlgmr.msrb.gmra.mxu2 %vm150_vm0, %v1032_v7 }
 0xb41   :  { %v1142_v21 = vpop.permute.xlu1 %1141 }
 0xb49   :  { %v1154_v26 = vpop.permute.xlu1 %1153 }
 0xb92   :  { %v1091_v0 = vpop.permute.xlu2 %1090 }
 0xb93   :  { %1766 = vmatmul.msk.bf16.vlgmr.msra.gmra.mxu0 %vm150_vm0, %v1091_v0 }
 0xc10   :  { %v1104_v2 = vpop.f32.mrf.mxu0 }
 0xc11   :  { %v1105_v52 = vadd.f32 1e-05, %v1104_v2 }
 0xc13   :  { %1949 = vrsqrt.f32 %v1105_v52  ;;  %vm1115_vm13 = vweird.f32 %v1105_v52 }
 0xc18   :  { %v1106_v54 = vpop.f32.mrf.mxu0 }
 0xc19   :  { %v1950_v55 = vpop.eup %1949  ;;  %v1107_v56 = vadd.f32 1e-05, %v1106_v54  ;;  %v1176_v54 = vmul.f32 %v2595_v8, %v2405_v25  ;;  %v1171_v25 = vmul.f32 %v2593_v19, %v2460_v62 }
 0xc1a   :  { %v1110_v57 = vmul.f32 %v1950_v55, %v1105_v52  ;;  %vm1116_vm12 = vweird.f32 %v1950_v55 }
 0xc1b   :  { %1951 = vrsqrt.f32 %v1107_v56  ;;  %vm1117_vm14 = vmor %vm1115_vm13, %vm1116_vm12  ;;  %vm1125_vm1 = vweird.f32 %v1107_v56 }
 0xc1c   :  { %v1111_v58 = vmul.f32 %v1950_v55, %v1110_v57 }
 0xc1e   :  { %v1112_v61 = vmul.f32 0.5, %v1111_v58 }
 0xc20   :  { %v1113_v47 = vsub.f32 1.5, %v1112_v61 }
 0xc21   :  { %v1952_v28 = vpop.eup %1951 }
 0xc22   :  { %v1120_v46 = vmul.f32 %v1952_v28, %v1107_v56  ;;  %v1114_v53 = vmul.f32 %v1950_v55, %v1113_v47  ;;  %vm1126_vm15 = vweird.f32 %v1952_v28 }
 0xc23   :  { %vm1127_vm2 = vmor %vm1125_vm1, %vm1126_vm15 }
 0xc24   :  { %v1121_v63 = vmul.f32 %v1952_v28, %v1120_v46  ;;  %v1118_v3 = vsel %vm1117_vm14, %v1950_v55, %v1114_v53 }
 0xc25   :  { %1131 = vrot.lane.b32.xlu0 %v1118_v3, %s2118_s15 }
 0xc26   :  { %v1122_v14 = vmul.f32 0.5, %v1121_v63 }
 0xc28   :  { %v1123_v40 = vsub.f32 1.5, %v1122_v14 }
 0xc2a   :  { %v1124_v15 = vmul.f32 %v1952_v28, %v1123_v40 }
 0xc2c   :  { %v1128_v43 = vsel %vm1127_vm2, %v1952_v28, %v1124_v15 }
 0xc2d   :  { %1133 = vrot.lane.b32.xlu2 %v1128_v43, %s2118_s15  ;;  %1143 = vrot.lane.b32.xlu0 %v911_v16, %s2118_s15 }
 0xc35   :  { %1151 = vrot.lane.b32.xlu2 %v913_v9, %s2118_s15 }
 0xc87   :  { %v1134_v5 = vpop.permute.xlu2 %1133 }
 0xc88   :  { %v1138_v35 = vmul.f32 %v1134_v5, %v1085_v34 }
 0xc8f   :  { %v1152_v33 = vpop.permute.xlu2 %1151 }
 0xc97   :  { %v1132_v1 = vpop.permute.xlu0 %1131 }
 0xc98   :  { %v1137_v22 = vmul.f32 %v1132_v1, %v1084_v23 }
 0xc9a   :  { %v1147_v20 = vmul.f32 %v1142_v21, %v1137_v22 }
 0xc9c   :  { %v1157_v38 = vadd.f32 %v1152_v33, %v1147_v20 }
 0xc9e   :  { %v1165_v30 = vmul.f32 %v1157_v38, %v2357_v18  ;;  %v1163_v7 = vmul.f32 %v1157_v38, %v2347_v60  ;;  %v1161_v49 = vmul.f32 %v1157_v38, %v2351_v11  ;;  %v1159_v60 = vmul.f32 %v1157_v38, %v2370_v32 }
 0xc9f   :  { %v1144_v41 = vpop.permute.xlu0 %1143  ;;  %v1178_v11 = vmul.f32 %v2595_v8, %v2395_v17  ;;  %v1174_v32 = vmul.f32 %v2595_v8, %v2452_v50  ;;  %v1173_v17 = vmul.f32 %v2593_v19, %v2412_v36 }
 0xca0   :  { %v1148_v6 = vmul.f32 %v1144_v41, %v1138_v35  ;;  %v905_v35 = vld [vmem:[#allocation5 + $0xc8] sm:$0xff]  ;;  %v904_v41 = vld [vmem:[#allocation5 + $0xc0] sm:$0xff] }
 0xca1   :  { %v1180_v56 = vpack.c.bf16 %v1174_v32, %v1173_v17 }
 0xca2   :  { %v1158_v45 = vadd.f32 %v1154_v26, %v1148_v6  ;;  %v908_v6 = vld [vmem:[#allocation5 + $0xd8] sm:$0xff] }
 0xca4   :  { %v1166_v0 = vmul.f32 %v1158_v45, %v2345_v59  ;;  %v1164_v48 = vmul.f32 %v1158_v45, %v2363_v12  ;;  %v1162_v23 = vmul.f32 %v1158_v45, %v2353_v13  ;;  %v1160_v18 = vmul.f32 %v1158_v45, %v2368_v27 }
 0xca5   :  { %v1177_v13 = vmul.f32 %v2593_v19, %v2390_v4  ;;  %v1175_v27 = vmul.f32 %v2593_v19, %v2403_v24  ;;  %v1172_v4 = vmul.f32 %v2595_v8, %v2414_v37  ;;  %v1045_v24 = vpop.f32.mrf.mxu2 }
 0xca6   :  { %v1170_v2 = vpack.c.bf16 %v1166_v0, %v1165_v30  ;;  %v1169_v52 = vpack.c.bf16 %v1164_v48, %v1163_v7  ;;  %v1168_v34 = vpack.c.bf16 %v1162_v23, %v1161_v49  ;;  %v1167_v59 = vpack.c.bf16 %v1160_v18, %v1159_v60  ;;  %v907_v0 = vld [vmem:[#allocation5 + $0xd0] sm:$0xff] }
 0xca7   :  { %v1182_v12 = vpack.c.bf16 %v1178_v11, %v1177_v13  ;;  %v1181_v55 = vpack.c.bf16 %v1176_v54, %v1175_v27  ;;  %v1179_v57 = vpack.c.bf16 %v1172_v4, %v1171_v25  ;;  %v1046_v47 = vadd.f32 1e-05, %v1045_v24 }
 0xca8   :  { %1194 = vrot.lane.b32.xlu0 %v1170_v2, %s2119_s17  ;;  %1192 = vrot.lane.b32.xlu2 %v1169_v52, %s2119_s17 }
 0xca9   :  { %1190 = vrot.lane.b32.xlu1 %v1168_v34, %s2119_s17  ;;  %vm1056_vm8 = vweird.f32 %v1046_v47 }
 0xcad   :  { %v1047_v58 = vpop.f32.mrf.mxu2 }
 0xcae   :  { %v1048_v61 = vadd.f32 1e-05, %v1047_v58 }
 0xcb0   :  { %1188 = vrot.lane.b32.xlu0 %v1167_v59, %s2119_s17  ;;  %1953 = vrsqrt.f32 %v1048_v61  ;;  %vm1066_vm6 = vweird.f32 %v1048_v61 }
 0xcb1   :  { %1955 = vrsqrt.f32 %v1046_v47 }
 0xcb6   :  { %v1954_v50 = vpop.eup %1953 }
 0xcb7   :  { %v1956_v36 = vpop.eup %1955  ;;  %v1061_v28 = vmul.f32 %v1954_v50, %v1048_v61  ;;  %vm1067_vm3 = vweird.f32 %v1954_v50 }
 0xcb8   :  { %1270 = vrot.lane.b32.xlu0 %v1182_v12, %s2114_s16  ;;  %v1051_v46 = vmul.f32 %v1956_v36, %v1046_v47  ;;  %vm1057_vm4 = vweird.f32 %v1956_v36  ;;  %vm1068_vm7 = vmor %vm1066_vm6, %vm1067_vm3  ;;  %v1885_v47 = vld [vmem:[%s2776_s2 + $0x10] sm:$0xff] }
 0xcb9   :  { %v1062_v53 = vmul.f32 %v1954_v50, %v1061_v28  ;;  %vm1058_vm9 = vmor %vm1056_vm8, %vm1057_vm4 }
 0xcba   :  { %v1052_v8 = vmul.f32 %v1956_v36, %v1051_v46 }
 0xcbb   :  { %v1063_v62 = vmul.f32 0.5, %v1062_v53 }
 0xcbc   :  { %v1053_v19 = vmul.f32 0.5, %v1052_v8 }
 0xcbd   :  { %v1064_v14 = vsub.f32 1.5, %v1063_v62 }
 0xcbe   :  { %v1054_v16 = vsub.f32 1.5, %v1053_v19 }
 0xcbf   :  { %v1065_v43 = vmul.f32 %v1954_v50, %v1064_v14 }
 0xcc0   :  { %1268 = vrot.lane.b32.xlu0 %v1181_v55, %s2114_s16  ;;  %v1055_v9 = vmul.f32 %v1956_v36, %v1054_v16 }
 0xcc1   :  { %v1069_v21 = vsel %vm1068_vm7, %v1954_v50, %v1065_v43 }
 0xcc2   :  { %v1059_v20 = vsel %vm1058_vm9, %v1956_v36, %v1055_v9  ;;  %v1071_v33 = vmul.f32 %v1069_v21, %v2610_v44  ;;  %v1890_v21 = vld [vmem:[%s2777_s3 + $0x34] sm:$0xf0] }
 0xcc3   :  { %v1070_v38 = vmul.f32 %v1059_v20, %v2606_v29  ;;  %v1799_v20 = vld [vmem:[%s2777_s3 + $0x38] sm:$0xf0] }
 0xcc4   :  { %v1073_v26 = vmul.f32 %v1071_v33, %v905_v35 }
 0xcc5   :  { %v1072_v30 = vmul.f32 %v1070_v38, %v904_v41  ;;  %v1789_v41 = vld [vmem:[%s2777_s3 + $0x20] sm:$0xf] }
 0xcc6   :  { %v1075_v48 = vadd.f32 %v1073_v26, %v908_v6  ;;  %v1888_v26 = vld [vmem:[%s2777_s3 + $0x24] sm:$0xf0]  ;;  %v1887_v6 = vld [vmem:[%s2777_s3 + $0x24] sm:$0xf] }
 0xcc7   :  { %v1074_v49 = vadd.f32 %v1072_v30, %v907_v0  ;;  %v1790_v30 = vor.u32 %v1888_v26, %v1789_v41 }
 0xcc8   :  { %1266 = vrot.lane.b32.xlu0 %v1180_v56, %s2114_s16 }
 0xcc9   :  { %v1183_v23 = vpack.c.bf16 %v1075_v48, %v1074_v49 }
 0xcd0   :  { %1264 = vrot.lane.b32.xlu0 %v1179_v57, %s2114_s16 }
 0xd02   :  { %v1193_v3 = vpop.permute.xlu2 %1192 }
 0xd03   :  { %v1206_v15 = vsel %vm150_vm0, %v1193_v3, 0 }
 0xd1a   :  { %v1195_v63 = vpop.permute.xlu0 %1194 }
 0xd1b   :  { %v1209_v37 = vsel %vm150_vm0, %v1195_v63, 0  ;;  %v1191_v5 = vpop.permute.xlu1 %1190 }
 0xd1c   :  { %1215 = vmatpush.bf16.xpose.msrb.mxu1 %v1209_v37  ;;  %v1203_v22 = vsel %vm150_vm0, %v1191_v5, 0  ;;  %v1797_v5 = vld [vmem:[%s2777_s3 + $0x30] sm:$0xf] }
 0xd22   :  { %v1189_v40 = vpop.permute.xlu0 %1188 }
 0xd23   :  { %v1200_v7 = vsel %vm150_vm0, %v1189_v40, 0 }
 0xd24   :  { %1216 = vmatpush.bf16.xpose.msrb.mxu1 %v1206_v15 }
 0xd2a   :  { %v1271_v1 = vpop.permute.xlu0 %1270 }
 0xd2b   :  { %1283 = vmatpush.bf16.msrb.mxu3 %v1271_v1  ;;  %v1889_v1 = vld [vmem:[%s2777_s3 + $0x34] sm:$0xf] }
 0xd2c   :  { %1217 = vmatpush.bf16.xpose.msrb.mxu1 %v1203_v22  ;;  %v1798_v22 = vor.u32 %v1890_v21, %v1797_v5  ;;  %v1802_v35 = vor.u32 %v1889_v1, %v1799_v20 }
 0xd2e   :  { %1413 = vmatpush.bf16.msrb.mxu2 %v1798_v22 }
 0xd32   :  { %v1269_v45 = vpop.permute.xlu0 %1268  ;;  %1414 = vmatpush.bf16.msrb.mxu2 %v1790_v30 }
 0xd33   :  { %1284 = vmatpush.bf16.msrb.mxu3 %v1269_v45 }
 0xd34   :  { %1218 = vmatpush.bf16.xpose.msrb.mxu1 %v1200_v7  ;;  %v1791_v7 = vld [vmem:[%s2777_s3 + $0x28] sm:$0xf0] }
 0xd35   :  { %v1794_v0 = vor.u32 %v1887_v6, %v1791_v7 }
 0xd3a   :  { %v1267_v2 = vpop.permute.xlu0 %1266 }
 0xd3b   :  { %1767 = vmatmul.msk.bf16.vlgmr.msrb.gmra.mxu1 %vm150_vm0, %v1183_v23  ;;  %1285 = vmatpush.bf16.msrb.mxu3 %v1267_v2 }
 0xd42   :  { %v1265_v44 = vpop.permute.xlu0 %1264 }
 0xd43   :  { %1286 = vmatpush.bf16.msrb.mxu3 %v1265_v44 }
 0xd47   :  { %1427 = vmatpush.bf16.msra.mxu3 %v1802_v35 }
 0xd4b   :  { %1428 = vmatpush.bf16.msra.mxu3 %v1794_v0 }
 0xdb8   :  { %v1220_v29 = vpop.f32.mrf.mxu1 }
 0xdb9   :  { %v1221_v52 = vadd.f32 %v1220_v29, %v2416_v39 }
 0xdbb   :  { %v1225_v34 = vsel %vm535_vm5, %v1221_v52, -inf }
 0xdbc   :  { %1226 = vmax.xlane.f32.xlu2 %v1225_v34 }
 0xdc0   :  { %v1222_v18 = vpop.f32.mrf.mxu1 }
 0xdc1   :  { %v1223_v60 = vadd.f32 %v1222_v18, %v2420_v42  ;;  %v1886_v42 = vld [vmem:[%s2776_s2 + $0x18] sm:$0xff] }
 0xdc2   :  { %1320 = vmatpush.bf16.msrb.mxu0 %v1886_v42 }
 0xdc3   :  { %v1228_v59 = vsel %vm535_vm5, %v1223_v60, -inf }
 0xdc4   :  { %1229 = vmax.xlane.f32.xlu1 %v1228_v59 }
 0xdc6   :  { %1321 = vmatpush.bf16.msrb.mxu0 %v1885_v47  ;;  %v1898_v47 = vld [vmem:[%s2778_s4 + $0x78] sm:$0xff] }
 0xdca   :  { %1543 = vmatpush.bf16.msra.mxu0 %v1898_v47 }
 0xe2f   :  { %v1227_v11 = vpop.xlane.xlu2 %1226 }
 0xe30   :  { %v1231_v13 = vsub.f32 %v1221_v52, %v1227_v11 }
 0xe32   :  { %v1233_v12 = vmul.f32 1.442695, %v1231_v13 }
 0xe34   :  { %1957 = vpow2.f32 %v1233_v12 }
 0xe37   :  { %v1230_v54 = vpop.xlane.xlu1 %1229 }
 0xe38   :  { %v1232_v27 = vsub.f32 %v1223_v60, %v1230_v54 }
 0xe3a   :  { %v1235_v55 = vmul.f32 1.442695, %v1232_v27  ;;  %v1958_v32 = vpop.eup %1957 }
 0xe3c   :  { %1959 = vpow2.f32 %v1235_v55  ;;  %v898_v55 = vld [vmem:[#allocation5 + $0xa0] sm:$0xff] }
 0xe42   :  { %v1960_v17 = vpop.eup %1959 }
 0xe43   :  { %v1237_v39 = vpack.c.bf16 %v1960_v17, %v1958_v32 }
 0xe45   :  { %1768 = vmatmul.msk.bf16.vlgmr.msra.gmra.mxu2 %vm535_vm5, %v1237_v39 }
 0xec8   :  { %v1250_v56 = vpop.f32.mrf.mxu2 }
 0xec9   :  { %1961 = vrcp.f32 %v1250_v56 }
 0xecf   :  { %v1962_v25 = vpop.eup %1961 }
 0xed0   :  { %v1252_v4 = vpop.f32.mrf.mxu2  ;;  %v1257_v24 = vmul.f32 %v1962_v25, %v1958_v32  ;;  %v902_v25 = vld [vmem:[#allocation5 + $0xb8] sm:$0xff] }
 0xed1   :  { %1963 = vrcp.f32 %v1252_v4  ;;  %v901_v4 = vld [vmem:[#allocation5 + $0xb0] sm:$0xff] }
 0xed7   :  { %v1964_v57 = vpop.eup %1963 }
 0xed8   :  { %v1258_v58 = vmul.f32 %v1964_v57, %v1960_v17  ;;  %v899_v17 = vld [vmem:[#allocation5 + $0xa8] sm:$0xff] }
 0xeda   :  { %v1259_v61 = vpack.c.bf16 %v1258_v58, %v1257_v24 }
 0xedc   :  { %1769 = vmatmul.msk.bf16.vlgmr.msrb.gmra.mxu3 %vm535_vm5, %v1259_v61 }
 0xf5f   :  { %v1288_v50 = vpop.f32.mrf.mxu3 }
 0xf67   :  { %v1290_v36 = vpop.f32.mrf.mxu3 }
 0xf68   :  { %v1293_v28 = vpack.c.bf16 %v1290_v36, %v1288_v50  ;;  %v1897_v50 = vld [vmem:[%s2778_s4 + $0x70] sm:$0xff]  ;;  %v1896_v36 = vld [vmem:[%s2778_s4 + $0x68] sm:$0xff] }
 0xf69   :  { %1544 = vmatpush.bf16.msra.mxu0 %v1897_v50 }
 0xf6a   :  { %1782 = vmatmul.msk.bf16.vlgmr.msrb.gmra.mxu0 %vm150_vm0, %v1293_v28  ;;  %v1895_v28 = vld [vmem:[%s2778_s4 + $0x60] sm:$0xff] }
 0xf6d   :  { %1545 = vmatpush.bf16.msra.mxu0 %v1896_v36 }
 0xf71   :  { %1546 = vmatpush.bf16.msra.mxu0 %v1895_v28 }
 0xfe7   :  { %v1323_v46 = vpop.f32.mrf.mxu0 }
 0xfe8   :  { %v2677_v53 = vadd.f32 %v1323_v46, %v2550_v51  ;;  %v1894_v46 = vld [vmem:[%s2778_s4 + $0x58] sm:$0xff] }
 0xfe9   :  { %1547 = vmatpush.bf16.msra.mxu0 %v1894_v46 }
 0xfea   :  { %v1330_v63 = vsel %vm150_vm0, %v2677_v53, 0.0 }
 0xfeb   :  { %1331 = vadd.xlane.f32.xlu0 %v1330_v63  ;;  %v1893_v63 = vld [vmem:[%s2778_s4 + $0x50] sm:$0xff] }
 0xfed   :  { %1548 = vmatpush.bf16.msra.mxu0 %v1893_v63 }
 0xfef   :  { %v1325_v37 = vpop.f32.mrf.mxu0 }
 0xff0   :  { %v2682_v8 = vadd.f32 %v1325_v37, %v2555_v31 }
 0xff2   :  { %v1333_v62 = vsel %vm150_vm0, %v2682_v8, 0.0 }
 0xff3   :  { %1334 = vadd.xlane.f32.xlu2 %v1333_v62 }
0x105e   :  { %v1332_v19 = vpop.xlane.xlu0 %1331 }
0x105f   :  { %v1336_v3 = vmul.f32 %v1332_v19, %v2212_v10  ;;  %v1892_v19 = vld [vmem:[%s2778_s4 + $0x48] sm:$0xff] }
0x1060   :  { %1549 = vmatpush.bf16.msra.mxu0 %v1892_v19 }
0x1061   :  { %v1338_v14 = vsub.f32 %v2677_v53, %v1336_v3  ;;  %v1891_v3 = vld [vmem:[%s2778_s4 + $0x40] sm:$0xff] }
0x1063   :  { %v1340_v40 = vmul.f32 %v1338_v14, %v1338_v14 }
0x1064   :  { %1550 = vmatpush.bf16.msra.mxu0 %v1891_v3 }
0x1065   :  { %v1342_v51 = vsel %vm150_vm0, %v1340_v40, 0.0 }
0x1066   :  { %1343 = vadd.xlane.f32.xlu1 %v1342_v51  ;;  %v1335_v15 = vpop.xlane.xlu2 %1334 }
0x1067   :  { %v1337_v16 = vmul.f32 %v1335_v15, %v2212_v10 }
0x1069   :  { %v1339_v43 = vsub.f32 %v2682_v8, %v1337_v16 }
0x106b   :  { %v1341_v31 = vmul.f32 %v1339_v43, %v1339_v43 }
0x106d   :  { %v1345_v9 = vsel %vm150_vm0, %v1341_v31, 0.0 }
0x106e   :  { %1346 = vadd.xlane.f32.xlu2 %v1345_v9 }
0x10d9   :  { %v1344_v33 = vpop.xlane.xlu1 %1343 }
0x10da   :  { %v1348_v38 = vmul.f32 %v1344_v33, %v2212_v10 }
0x10dc   :  { %v1350_v45 = vadd.f32 1e-05, %v1348_v38 }
0x10de   :  { %1965 = vrsqrt.f32 %v1350_v45  ;;  %vm1358_vm10 = vweird.f32 %v1350_v45 }
0x10e1   :  { %v1347_v48 = vpop.xlane.xlu2 %1346 }
0x10e2   :  { %v1349_v49 = vmul.f32 %v1347_v48, %v2212_v10 }
0x10e4   :  { %v1966_v23 = vpop.eup %1965  ;;  %v1351_v2 = vadd.f32 1e-05, %v1349_v49 }
0x10e5   :  { %v1353_v44 = vmul.f32 %v1966_v23, %v1350_v45  ;;  %vm1359_vm5 = vweird.f32 %v1966_v23 }
0x10e6   :  { %1967 = vrsqrt.f32 %v1351_v2  ;;  %vm1360_vm11 = vmor %vm1358_vm10, %vm1359_vm5  ;;  %vm1368_vm13 = vweird.f32 %v1351_v2 }
0x10e7   :  { %v1354_v29 = vmul.f32 %v1966_v23, %v1353_v44 }
0x10e9   :  { %v1355_v52 = vmul.f32 0.5, %v1354_v29 }
0x10eb   :  { %v1356_v34 = vsub.f32 1.5, %v1355_v52 }
0x10ec   :  { %v1968_v18 = vpop.eup %1967 }
0x10ed   :  { %v1357_v60 = vmul.f32 %v1966_v23, %v1356_v34  ;;  %v1363_v59 = vmul.f32 %v1968_v18, %v1351_v2  ;;  %vm1369_vm12 = vweird.f32 %v1968_v18 }
0x10ee   :  { %vm1370_vm14 = vmor %vm1368_vm13, %vm1369_vm12 }
0x10ef   :  { %v1364_v11 = vmul.f32 %v1968_v18, %v1363_v59  ;;  %v1361_v13 = vsel %vm1360_vm11, %v1966_v23, %v1357_v60 }
0x10f0   :  { %v1372_v27 = vmul.f32 %v1361_v13, %v1338_v14 }
0x10f1   :  { %v1365_v12 = vmul.f32 0.5, %v1364_v11 }
0x10f2   :  { %v1374_v42 = vmul.f32 %v1372_v27, %v898_v55 }
0x10f3   :  { %v1366_v54 = vsub.f32 1.5, %v1365_v12 }
0x10f4   :  { %v1376_v24 = vadd.f32 %v1374_v42, %v901_v4 }
0x10f5   :  { %v1367_v32 = vmul.f32 %v1968_v18, %v1366_v54 }
0x10f7   :  { %v1371_v39 = vsel %vm1370_vm14, %v1968_v18, %v1367_v32 }
0x10f8   :  { %v1373_v56 = vmul.f32 %v1371_v39, %v1339_v43 }
0x10fa   :  { %v1375_v57 = vmul.f32 %v1373_v56, %v899_v17 }
0x10fc   :  { %v1377_v58 = vadd.f32 %v1375_v57, %v902_v25 }
0x10fe   :  { %v1378_v61 = vpack.c.bf16 %v1377_v58, %v1376_v24 }
0x1100   :  { %1803 = vmatmul.msk.bf16.vlgmr.msrb.gmra.mxu2 %vm150_vm0, %v1378_v61  ;;  %1804 = vmatmul.msk.bf16.vlgmr.msra.gmra.mxu3 %vm150_vm0, %v1378_v61 }
0x1183   :  { %v1416_v37 = vpop.f32.mrf.mxu2  ;;  %v1430_v38 = vpop.f32.mrf.mxu3 }
0x1184   :  { %v1805_v62 = vmul.f32 -1.442695, %v1416_v37 }
0x1186   :  { %1969 = vpow2.f32 %v1805_v62 }
0x118b   :  { %v1418_v14 = vpop.f32.mrf.mxu2  ;;  %v1432_v52 = vpop.f32.mrf.mxu3 }
0x118c   :  { %v1970_v40 = vpop.eup %1969  ;;  %v1806_v51 = vmul.f32 -1.442695, %v1418_v14 }
0x118d   :  { %v1441_v15 = vadd.f32 1.0, %v1970_v40 }
0x118e   :  { %1971 = vpow2.f32 %v1806_v51 }
0x118f   :  { %1973 = vrcp.f32 %v1441_v15  ;;  %v1454_v20 = vand.u32 2147483648, %v1441_v15  ;;  %vm1448_vm1 = vweird.f32 %v1441_v15  ;;  %v1452_v33 = vand.u32 2147483647, %v1441_v15 }
0x1191   :  { %v1455_v6 = vor.u32 1.1754944e-38, %v1454_v20  ;;  %vm1453_vm3 = vcmp.eq.f32.partialorder %v1452_v33, 8.507059e+37  ;;  %v1856_v20 = vld [vmem:[%s2780_s6 + $0x18] sm:$0xff] }
0x1194   :  { %v1972_v16 = vpop.eup %1971 }
0x1195   :  { %v1974_v43 = vpop.eup %1973  ;;  %v1442_v31 = vadd.f32 1.0, %v1972_v16  ;;  %v1855_v16 = vld [vmem:[%s2780_s6 + $0x10] sm:$0xff] }
0x1196   :  { %v1444_v9 = vmul.f32 %v1974_v43, %v1441_v15  ;;  %vm1449_vm15 = vweird.f32 %v1974_v43 }
0x1197   :  { %1975 = vrcp.f32 %v1442_v31  ;;  %vm1450_vm2 = vmor %vm1448_vm1, %vm1449_vm15  ;;  %v1469_v45 = vand.u32 2147483648, %v1442_v31  ;;  %v1467_v7 = vand.u32 2147483647, %v1442_v31  ;;  %vm1463_vm6 = vweird.f32 %v1442_v31 }
0x1198   :  { %v1445_v5 = vsub.f32 1.0, %v1444_v9 }
0x1199   :  { %v1470_v49 = vor.u32 1.1754944e-38, %v1469_v45  ;;  %vm1468_vm8 = vcmp.eq.f32.partialorder %v1467_v7, 8.507059e+37 }
0x119a   :  { %v1446_v21 = vmul.f32 %v1974_v43, %v1445_v5 }
0x119c   :  { %v1447_v1 = vadd.f32 %v1974_v43, %v1446_v21  ;;  %v1560_v21 = vld [vmem:[%s2780_s6 + $0x8] sm:$0xff] }
0x119d   :  { %v1976_v22 = vpop.eup %1975 }
0x119e   :  { %v1459_v35 = vmul.f32 %v1976_v22, %v1442_v31  ;;  %v1451_v41 = vsel %vm1450_vm2, %v1974_v43, %v1447_v1  ;;  %vm1464_vm4 = vweird.f32 %v1976_v22 }
0x119f   :  { %v1456_v0 = vsel %vm1453_vm3, %v1455_v6, %v1451_v41  ;;  %vm1465_vm7 = vmor %vm1463_vm6, %vm1464_vm4 }
0x11a0   :  { %v1460_v26 = vsub.f32 1.0, %v1459_v35  ;;  %v1473_v23 = vmul.f32 %v1456_v0, %v1416_v37 }
0x11a2   :  { %v1461_v30 = vmul.f32 %v1976_v22, %v1460_v26  ;;  %v1475_v34 = vmul.f32 %v1473_v23, %v1430_v38 }
0x11a4   :  { %v1462_v48 = vadd.f32 %v1976_v22, %v1461_v30 }
0x11a6   :  { %v1466_v2 = vsel %vm1465_vm7, %v1976_v22, %v1462_v48 }
0x11a7   :  { %v1471_v44 = vsel %vm1468_vm8, %v1470_v49, %v1466_v2 }
0x11a8   :  { %v1474_v29 = vmul.f32 %v1471_v44, %v1418_v14  ;;  %v1559_v14 = vld [vmem:[%s2780_s6] sm:$0xff] }
0x11aa   :  { %v1476_v18 = vmul.f32 %v1474_v29, %v1432_v52 }
0x11ac   :  { %v1477_v60 = vpack.c.bf16 %v1476_v18, %v1475_v34 }
0x11ae   :  { %1551 = vmatmul.bf16.vlgmr.msra.gmra.mxu0 %v1477_v60 }
0x122b   :  { %v1552_v59 = vpop.f32.mrf.mxu0 }
0x122c   :  { %v1557_v11 = vadd.f32 %v1552_v59, %v2677_v53 }
0x122e   :  { %v1564_v13 = vsel %vm150_vm0, %v1557_v11, 0.0 }
0x122f   :  { %1565 = vadd.xlane.f32.xlu1 %v1564_v13 }
0x1233   :  { %v1554_v12 = vpop.f32.mrf.mxu0 }
0x1234   :  { %v1558_v54 = vadd.f32 %v1554_v12, %v2682_v8 }
0x1236   :  { %v1567_v27 = vsel %vm150_vm0, %v1558_v54, 0.0 }
0x1237   :  { %1568 = vadd.xlane.f32.xlu2 %v1567_v27 }
0x12a2   :  { %v1566_v55 = vpop.xlane.xlu1 %1565 }
0x12a3   :  { %v1570_v32 = vmul.f32 %v1566_v55, %v2212_v10 }
0x12a5   :  { %v1572_v17 = vsub.f32 %v1557_v11, %v1570_v32 }
0x12a7   :  { %v1574_v39 = vmul.f32 %v1572_v17, %v1572_v17 }
0x12a9   :  { %v1576_v42 = vsel %vm150_vm0, %v1574_v39, 0.0 }
0x12aa   :  { %1577 = vadd.xlane.f32.xlu1 %v1576_v42  ;;  %v1569_v56 = vpop.xlane.xlu2 %1568 }
0x12ab   :  { %v1571_v53 = vmul.f32 %v1569_v56, %v2212_v10 }
0x12ad   :  { %v1573_v4 = vsub.f32 %v1558_v54, %v1571_v53 }
0x12af   :  { %v1575_v25 = vmul.f32 %v1573_v4, %v1573_v4 }
0x12b1   :  { %v1579_v57 = vsel %vm150_vm0, %v1575_v25, 0.0 }
0x12b2   :  { %1580 = vadd.xlane.f32.xlu2 %v1579_v57 }
0x131d   :  { %v1578_v8 = vpop.xlane.xlu1 %1577 }
0x131e   :  { %v1582_v24 = vmul.f32 %v1578_v8, %v2212_v10 }
0x1320   :  { %v1584_v58 = vadd.f32 1e-05, %v1582_v24 }
0x1322   :  { %1977 = vrsqrt.f32 %v1584_v58  ;;  %vm1592_vm5 = vweird.f32 %v1584_v58 }
0x1325   :  { %v1581_v61 = vpop.xlane.xlu2 %1580 }
0x1326   :  { %v1583_v47 = vmul.f32 %v1581_v61, %v2212_v10 }
0x1328   :  { %v1978_v50 = vpop.eup %1977  ;;  %v1585_v36 = vadd.f32 1e-05, %v1583_v47 }
0x1329   :  { %v1587_v28 = vmul.f32 %v1978_v50, %v1584_v58  ;;  %vm1593_vm9 = vweird.f32 %v1978_v50 }
0x132a   :  { %1979 = vrsqrt.f32 %v1585_v36  ;;  %vm1594_vm10 = vmor %vm1592_vm5, %vm1593_vm9  ;;  %vm1602_vm12 = vweird.f32 %v1585_v36 }
0x132b   :  { %v1588_v46 = vmul.f32 %v1978_v50, %v1587_v28 }
0x132d   :  { %v1589_v63 = vmul.f32 0.5, %v1588_v46 }
0x132f   :  { %v1590_v37 = vsub.f32 1.5, %v1589_v63 }
0x1330   :  { %v1980_v62 = vpop.eup %1979 }
0x1331   :  { %v1591_v19 = vmul.f32 %v1978_v50, %v1590_v37  ;;  %v1597_v3 = vmul.f32 %v1980_v62, %v1585_v36  ;;  %vm1603_vm11 = vweird.f32 %v1980_v62 }
0x1332   :  { %vm1604_vm13 = vmor %vm1602_vm12, %vm1603_vm11 }
0x1333   :  { %v1595_v40 = vsel %vm1594_vm10, %v1978_v50, %v1591_v19  ;;  %v1598_v51 = vmul.f32 %v1980_v62, %v1597_v3 }
0x1334   :  { %v1606_v10 = vmul.f32 %v1595_v40, %v1572_v17 }
0x1335   :  { %v1599_v15 = vmul.f32 0.5, %v1598_v51 }
0x1336   :  { %v1608_v43 = vmul.f32 %v1606_v10, %v1559_v14 }
0x1337   :  { %v1600_v31 = vsub.f32 1.5, %v1599_v15 }
0x1338   :  { %v1610_v9 = vadd.f32 %v1855_v16, %v1608_v43 }
0x1339   :  { %v1601_v5 = vmul.f32 %v1980_v62, %v1600_v31 }
0x133a   :  { %1612 = vst.msk [vmem:[#allocation10] sm:$0xff] %vm150_vm0, %v1610_v9 }
0x133b   :  { %v1605_v1 = vsel %vm1604_vm13, %v1980_v62, %v1601_v5 }
0x133c   :  { %v1607_v22 = vmul.f32 %v1605_v1, %v1573_v4 }
0x133e   :  { %v1609_v33 = vmul.f32 %v1607_v22, %v1560_v21 }
0x1340   :  { %v1611_v35 = vadd.f32 %v1856_v20, %v1609_v33 }
0x1342   :  { %1613 = vst.msk [vmem:[#allocation10 + $0x8] sm:$0xff] %vm150_vm0, %v1611_v35 }
0x1343   :  { %1626 = dma.vmem_to_hbm [thread:$0]  %s1619_s27, 256, %s1621_s29, [#allocation4], %s2110_s25, %s2110_s25, %s2111_s26  }
0x1344   :  { %2107 = dma.done.wait [#allocation4], 256  }
0x1345   :  { %2108 = vsyncadd [#allocation4], 4294967040 }
0x1346   :  { %1631 = vsyncpa [#allocation3], 1 }
0x1347   :  { %1632 = vsyncpa [#allocation6], 1 }
0x1348   :  { %1633 = vsyncpa [#allocation9], 1 }
0x1349   :  { %1634 = vsyncpa [#allocation4], 1 }

</bundles_post_ra>
